<compile_context>
chip_gen: v7x
topology: tpu7x:2x2x1
jax: 0.10.0
libtpu: 0.0.40
codegen_flags: <defaults>
</compile_context>

<pallas_src>
import functools
import re

import jax
import jax.numpy as jnp
from jax.experimental import pallas as pl
from jax.experimental.pallas import tpu as pltpu


# ----------------------------------------------------------------------------
# Small helpers
# ----------------------------------------------------------------------------
def _round_up(x, m):
    return ((x + m - 1) // m) * m


def _tpu_generation(default=6):
    """Best-effort TPU generation from device_kind (fallback: v6-class)."""
    try:
        kind = jax.devices()[0].device_kind.lower()
    except Exception:
        return default
    m = re.search(r"(\d+)", kind)
    return int(m.group(1)) if m else default


def _pick_tile(total, cap, align=8, require_align=False):
    """Largest divisor of `total` <= cap, preferring multiples of `align`."""
    cap = max(1, min(cap, total))
    best_any, best_aligned = 1, None
    for d in range(1, cap + 1):
        if total % d:
            continue
        best_any = d
        if d % align == 0:
            best_aligned = d
    if best_aligned is not None:
        return best_aligned
    if require_align:
        # Block == full array dim always satisfies the sublane constraint.
        return total
    return best_any


# ----------------------------------------------------------------------------
# Kernels
# ----------------------------------------------------------------------------
def _conv_accumulate(x_ref, w_ref, *, th, out_w, ksize):
    """Conv for one (row, cout) tile as ksize^2 shift-and-accumulate MXU dots.

    x_ref: (TH + 2*pad, Wp, Cin) haloed input window (compute dtype)
    w_ref: (K*K, Cin, CT)        flattened weights for one cout tile
    Returns the (TH*W, CT) float32 accumulator.  No im2col buffer, no
    lane-axis concatenate (previous copy-bound bottleneck).
    """
    cin = x_ref.shape[-1]
    acc = None
    for kh in range(ksize):
        for kw in range(ksize):
            xs = x_ref[kh:kh + th, kw:kw + out_w, :].reshape(th * out_w, cin)
            d = jnp.dot(xs, w_ref[kh * ksize + kw],
                        preferred_element_type=jnp.float32)
            acc = d if acc is None else acc + d
    return acc


def _conv_stats_kernel(x_ref, w_ref, y_ref, stats_ref, *, ksize):
    # x_ref:     (TH+2p, Wp, Cin)  one haloed row window
    # w_ref:     (K*K, Cin, CT)    weights for one cout tile
    # y_ref:     (TH, W, CT)       pre-BN conv output (bf16: halves pass-2 HBM)
    # stats_ref: (2, CT) f32       resident accumulator [sum; sum of squares]
    # Conv bias is skipped here: BatchNorm is shift-invariant, so it cancels.
    i = pl.program_id(2)                                   # row-tile index
    th, out_w, ct = y_ref.shape
    acc = _conv_accumulate(x_ref, w_ref, th=th, out_w=out_w, ksize=ksize)
    part = jnp.concatenate(
        [jnp.sum(acc, axis=0, keepdims=True),
         jnp.sum(acc * acc, axis=0, keepdims=True)], axis=0)   # (2, CT)

    @pl.when(i == 0)
    def _init():
        stats_ref[...] = part

    @pl.when(i > 0)
    def _accum():
        stats_ref[...] = stats_ref[...] + part

    y_ref[...] = acc.reshape(th, out_w, ct).astype(y_ref.dtype)


def _conv_bias_relu_kernel(x_ref, w_ref, b_ref, o_ref, *, ksize):
    # use_bn=False path: conv + bias + ReLU fused in a single pass.
    th, out_w, ct = o_ref.shape
    acc = _conv_accumulate(x_ref, w_ref, th=th, out_w=out_w, ksize=ksize)
    acc = acc + b_ref[...]                                  # (1, CT) broadcast
    o_ref[...] = jnp.maximum(acc, 0.0).reshape(th, out_w, ct).astype(o_ref.dtype)


def _bn_relu_kernel(y_ref, scale_ref, shift_ref, o_ref):
    # Mem-bound elementwise tail: y*scale + shift, ReLU (per-channel scale and
    # shift precomputed from the global batch statistics).
    y = y_ref[...].astype(jnp.float32)
    o_ref[...] = jnp.maximum(y * scale_ref[...] + shift_ref[...], 0.0
                             ).astype(o_ref.dtype)


# ----------------------------------------------------------------------------
# Wrapper
# ----------------------------------------------------------------------------
def conv_block(x_nchw, w_oihw, bias, gamma, beta, *, use_bn=True,
               compute_dtype=jnp.bfloat16, row_tile=None):
    """ConvBlock forward: Conv2d(k, pad=(k-1)/2) -> [BatchNorm2d batch stats] -> ReLU.

    x_nchw: (N, Cin, H, W). Returns (N, Cout, H, W) in x_nchw.dtype.
    """
    n, cin, h, w = x_nchw.shape
    cout, _, kh_, kw_ = w_oihw.shape
    assert kh_ == kw_, "square kernels only"
    ksize = kh_
    pad = (ksize - 1) // 2
    hp, wp = h + 2 * pad, w + 2 * pad
    k2 = ksize * ksize
    out_dtype = x_nchw.dtype
    itemsize = jnp.dtype(compute_dtype).itemsize

    # ---- generation-dependent tiling knobs ---------------------------------
    gen = _tpu_generation()
    ct = 256 if gen >= 6 else 128          # fill the 256-wide MXU on v6e/v7x
    ct = min(ct, _round_up(cout, 128))     # don't over-pad tiny layers
    coutp = _round_up(cout, ct)
    n_ct = coutp // ct
    if gen >= 7:                           # v7x: 64 MiB VMEM (32 MiB scoped)
        vmem_limit = 32 * 1024 * 1024
        conv_blk_budget = 1 << 20
        ew_blk_budget = 2 << 20
    else:                                  # v5e / v6e: 128 MiB physical VMEM
        vmem_limit = 64 * 1024 * 1024
        conv_blk_budget = 2 << 20
        ew_blk_budget = 4 << 20

    # Row tile: multiple of 8 when possible so M = TH*W stays sublane-aligned.
    per_row_bytes = itemsize * (w * ct + wp * cin)          # y row + x halo row
    if row_tile is None:
        th = _pick_tile(h, max(1, conv_blk_budget // per_row_bytes), align=8)
    else:
        th = row_tile
        assert h % th == 0, "row_tile must divide H"
    n_rt = h // th

    # ---- XLA glue: layout conversion, zero halo, channel padding -----------
    x = jnp.transpose(x_nchw, (0, 2, 3, 1)).astype(compute_dtype)      # NHWC
    x = jnp.pad(x, ((0, 0), (pad, pad), (pad, pad), (0, 0)))           # (N,Hp,Wp,Cin)
    # Overlapping row windows: each grid step DMAs only a (TH+2p, Wp, Cin)
    # block instead of keeping the whole padded image VMEM-resident (v7x).
    x_halo = jnp.stack(
        [x[:, i * th:i * th + th + 2 * pad] for i in range(n_rt)],
        axis=1)                                      # (N, n_rt, TH+2p, Wp, Cin)
    wf = jnp.transpose(w_oihw, (2, 3, 1, 0)).reshape(k2, cin, cout)    # HWIO
    wf = jnp.pad(wf, ((0, 0), (0, 0), (0, coutp - cout))).astype(compute_dtype)

    cparams = pltpu.CompilerParams(
        # batch / cout tiles are independent -> shard across v7x's 2 TensorCores;
        # row tiles ("arbitrary", innermost) run sequentially so the weight
        # block and the stats accumulator stay resident across them.
        dimension_semantics=("parallel", "parallel", "arbitrary"),
        vmem_limit_bytes=vmem_limit,
    )

    x_spec = pl.BlockSpec((None, None, th + 2 * pad, wp, cin),
                          lambda b, j, i: (b, i, 0, 0, 0))
    w_spec = pl.BlockSpec((k2, cin, ct), lambda b, j, i: (0, 0, j))
    y_spec = pl.BlockSpec((None, th, w, ct), lambda b, j, i: (b, i, 0, j))
    vec_spec = pl.BlockSpec((1, ct), lambda b, j, i: (0, j))

    if use_bn:
        # Pass 1: conv + per-(image, cout-tile) channel sum / sum-of-squares.
        stats_spec = pl.BlockSpec((None, 2, ct), lambda b, j, i: (b, 0, j))
        y, stats = pl.pallas_call(
            functools.partial(_conv_stats_kernel, ksize=ksize),
            grid_spec=pltpu.PrefetchScalarGridSpec(
                num_scalar_prefetch=0,
                grid=(n, n_ct, n_rt),
                in_specs=[x_spec, w_spec],
                out_specs=[y_spec, stats_spec],
            ),
            out_shape=(
                jax.ShapeDtypeStruct((n, h, w, coutp), compute_dtype),
                jax.ShapeDtypeStruct((n, 2, coutp), jnp.float32),
            ),
            compiler_params=cparams,
        )(x_halo, wf)

        # Tiny (KB-sized) global reduction + scale/shift precompute (plain JAX).
        cnt = jnp.float32(n * h * w)
        mean = jnp.sum(stats[:, 0, :], axis=0) / cnt
        var = jnp.maximum(jnp.sum(stats[:, 1, :], axis=0) / cnt - mean * mean,
                          0.0)
        inv = jax.lax.rsqrt(var + 1e-5)
        gamma_p = jnp.pad(gamma.astype(jnp.float32), (0, coutp - cout))
        beta_p = jnp.pad(beta.astype(jnp.float32), (0, coutp - cout))
        # Conv bias cancels under BN (shift invariance), so it never enters.
        scale = (gamma_p * inv).reshape(1, coutp)
        shift = (beta_p - mean * gamma_p * inv).reshape(1, coutp)

        # Pass 2: mem-bound elementwise normalize + ReLU on large flattened
        # lane-dense blocks (bf16 intermediate -> half the HBM read of f32).
        rows = n * h * w
        out_bytes = jnp.dtype(out_dtype).itemsize
        tr = _pick_tile(rows,
                        max(1, ew_blk_budget // (ct * (itemsize + out_bytes))),
                        align=8, require_align=True)
        yf = y.reshape(rows, coutp)                         # free (contiguous)
        row_spec = pl.BlockSpec((tr, ct), lambda r, j: (r, j))
        sc_spec = pl.BlockSpec((1, ct), lambda r, j: (0, j))
        out_flat = pl.pallas_call(
            _bn_relu_kernel,
            grid_spec=pltpu.PrefetchScalarGridSpec(
                num_scalar_prefetch=0,
                grid=(rows // tr, n_ct),
                in_specs=[row_spec, sc_spec, sc_spec],
                out_specs=row_spec,
            ),
            out_shape=jax.ShapeDtypeStruct((rows, coutp), out_dtype),
            compiler_params=pltpu.CompilerParams(
                dimension_semantics=("parallel", "parallel"),
                vmem_limit_bytes=vmem_limit),
        )(yf, scale, shift)
        out_nhwc = out_flat.reshape(n, h, w, coutp)
    else:
        bias_p = jnp.pad(bias.astype(jnp.float32),
                         (0, coutp - cout)).reshape(1, coutp)
        out_nhwc = pl.pallas_call(
            functools.partial(_conv_bias_relu_kernel, ksize=ksize),
            grid_spec=pltpu.PrefetchScalarGridSpec(
                num_scalar_prefetch=0,
                grid=(n, n_ct, n_rt),
                in_specs=[x_spec, w_spec, vec_spec],
                out_specs=y_spec,
            ),
            out_shape=jax.ShapeDtypeStruct((n, h, w, coutp), out_dtype),
            compiler_params=cparams,
        )(x_halo, wf, bias_p)

    # glue: drop channel padding + back to NCHW.
    return jnp.transpose(out_nhwc[..., :cout], (0, 3, 1, 2))


conv_block = jax.jit(conv_block,
                     static_argnames=("use_bn", "compute_dtype", "row_tile"))


# ----------------------------------------------------------------------------
# Pure-JAX reference (PyTorch semantics; training-mode BN)
# ----------------------------------------------------------------------------
def _reference(x_nchw, w_oihw, bias, gamma, beta, *, use_bn=True,
               conv_dtype=jnp.float32):
    y = jax.lax.conv_general_dilated(
        x_nchw.astype(conv_dtype), w_oihw.astype(conv_dtype),
        window_strides=(1, 1), padding=((1, 1), (1, 1)),
        dimension_numbers=("NCHW", "OIHW", "NCHW"),
        preferred_element_type=jnp.float32,
    ) + bias.reshape(1, -1, 1, 1)
    if use_bn:
        mean = jnp.mean(y, axis=(0, 2, 3), keepdims=True)
        var = jnp.mean(jnp.square(y - mean), axis=(0, 2, 3), keepdims=True)
        y = (y - mean) * jax.lax.rsqrt(var + 1e-5)
        y = y * gamma.reshape(1, -1, 1, 1) + beta.reshape(1, -1, 1, 1)
    return jnp.maximum(y, 0.0).astype(x_nchw.dtype)


if __name__ == "__main__":
    key = jax.random.PRNGKey(0)
    k_x, k_w, k_b, k_g, k_be = jax.random.split(key, 5)

    N, CIN, COUT, H, W, K = 2, 4, 8, 16, 16, 3

    x = jax.random.normal(k_x, (N, CIN, H, W), dtype=jnp.float32)
    w = jax.random.normal(k_w, (COUT, CIN, K, K), dtype=jnp.float32) * 0.1
    b = jax.random.normal(k_b, (COUT,), dtype=jnp.float32) * 0.1
    gamma = 1.0 + 0.1 * jax.random.normal(k_g, (COUT,), dtype=jnp.float32)
    beta = 0.1 * jax.random.normal(k_be, (COUT,), dtype=jnp.float32)

    # --- BN path; row_tile=4 -> 4 row tiles per image: exercises the haloed
    #     input windows and the resident stats accumulator across row tiles.
    out = conv_block(x, w, b, gamma, beta, use_bn=True, row_tile=4)
    out = jax.block_until_ready(out)
    assert out.shape == (N, COUT, H, W)

    # Check vs a reference with identical bf16 conv operand rounding (the only
    # extra error source is the bf16 pre-BN intermediate).
    ref_bf16 = _reference(x, w, b, gamma, beta, use_bn=True,
                          conv_dtype=jnp.bfloat16)
    assert jnp.allclose(out, ref_bf16, atol=2.5e-2, rtol=2.5e-2), \
        float(jnp.max(jnp.abs(out - ref_bf16)))
    # Sanity check vs exact f32 module semantics (bf16-operand tolerance).
    ref_f32 = _reference(x, w, b, gamma, beta, use_bn=True)
    assert jnp.allclose(out, ref_f32, atol=7e-2, rtol=7e-2), \
        float(jnp.max(jnp.abs(out - ref_f32)))

    # --- BN path with default (auto) tiling: single full-height row tile.
    out_d = conv_block(x, w, b, gamma, beta, use_bn=True)
    out_d = jax.block_until_ready(out_d)
    assert jnp.allclose(out_d, ref_bf16, atol=2.5e-2, rtol=2.5e-2), \
        float(jnp.max(jnp.abs(out_d - ref_bf16)))

    # --- no-BN path (conv + bias + ReLU fused in one kernel).
    out_nb = conv_block(x, w, b, gamma, beta, use_bn=False, row_tile=8)
    out_nb = jax.block_until_ready(out_nb)
    ref_nb = _reference(x, w, b, gamma, beta, use_bn=False,
                        conv_dtype=jnp.bfloat16)
    assert jnp.allclose(out_nb, ref_nb, atol=2e-3, rtol=2e-3), \
        float(jnp.max(jnp.abs(out_nb - ref_nb)))

    print("KERNEL_OK")
</pallas_src>

<mosaic_0001>
module attributes {stable_mosaic.version = 11 : i64} {
  func.func @_conv_stats_kernel(%arg0: i32, %arg1: i32, %arg2: i32, %arg3: memref<1x1x6x18x4xbf16, #tpu.memory_space<vmem>>, %arg4: memref<9x4x128xbf16, #tpu.memory_space<vmem>>, %arg5: memref<1x4x16x128xbf16, #tpu.memory_space<vmem>>, %arg6: memref<1x2x128xf32, #tpu.memory_space<vmem>>) attributes {dimension_semantics = [#tpu.dimension_semantics<parallel>, #tpu.dimension_semantics<parallel>, #tpu.dimension_semantics<arbitrary>], iteration_bounds = array<i64: 2, 1, 4>, scalar_prefetch = 0 : i64, scratch_operands = 0 : i64, tpu.core_type = #tpu.core_type<tc>, window_params = [{transform_indices = @transform_0, window_bounds = array<i64: 1, 1, 6, 18, 4>}, {transform_indices = @transform_1, window_bounds = array<i64: 9, 4, 128>}, {transform_indices = @transform_2, window_bounds = array<i64: 1, 4, 16, 128>}, {transform_indices = @transform_3, window_bounds = array<i64: 1, 2, 128>}]} {
    %c0 = arith.constant 0 : index
    %c0_0 = arith.constant 0 : index
    %c0_1 = arith.constant 0 : index
    %c0_2 = arith.constant 0 : index
    %c0_3 = arith.constant 0 : index
    %0 = vector.load %arg3[%c0, %c0_0, %c0_1, %c0_2, %c0_3] : memref<1x1x6x18x4xbf16, #tpu.memory_space<vmem>>, vector<1x1x4x16x4xbf16>
    %1 = vector.shape_cast %0 : vector<1x1x4x16x4xbf16> to vector<4x16x4xbf16>
    %2 = vector.shape_cast %1 : vector<4x16x4xbf16> to vector<64x4xbf16>
    %c0_4 = arith.constant 0 : index
    %c0_5 = arith.constant 0 : index
    %c0_6 = arith.constant 0 : index
    %3 = vector.load %arg4[%c0_4, %c0_5, %c0_6] : memref<9x4x128xbf16, #tpu.memory_space<vmem>>, vector<1x4x128xbf16>
    %4 = vector.shape_cast %3 : vector<1x4x128xbf16> to vector<4x128xbf16>
    %cst = arith.constant dense<0.000000e+00> : vector<64x128xf32>
    %5 = tpu.matmul %2, %4, %cst {dimension_numbers = #tpu.dot_dimension_numbers<[1], [0], [0], [1], [0, 0, 1, 1], [], []>} : vector<64x4xbf16>, vector<4x128xbf16>, vector<64x128xf32> -> vector<64x128xf32>
    %c0_7 = arith.constant 0 : index
    %c0_8 = arith.constant 0 : index
    %c0_9 = arith.constant 0 : index
    %c1 = arith.constant 1 : index
    %c0_10 = arith.constant 0 : index
    %6 = vector.load %arg3[%c0_7, %c0_8, %c0_9, %c1, %c0_10] : memref<1x1x6x18x4xbf16, #tpu.memory_space<vmem>>, vector<1x1x4x16x4xbf16>
    %7 = vector.shape_cast %6 : vector<1x1x4x16x4xbf16> to vector<4x16x4xbf16>
    %8 = vector.shape_cast %7 : vector<4x16x4xbf16> to vector<64x4xbf16>
    %c1_11 = arith.constant 1 : index
    %c0_12 = arith.constant 0 : index
    %c0_13 = arith.constant 0 : index
    %9 = vector.load %arg4[%c1_11, %c0_12, %c0_13] : memref<9x4x128xbf16, #tpu.memory_space<vmem>>, vector<1x4x128xbf16>
    %10 = vector.shape_cast %9 : vector<1x4x128xbf16> to vector<4x128xbf16>
    %cst_14 = arith.constant dense<0.000000e+00> : vector<64x128xf32>
    %11 = tpu.matmul %8, %10, %cst_14 {dimension_numbers = #tpu.dot_dimension_numbers<[1], [0], [0], [1], [0, 0, 1, 1], [], []>} : vector<64x4xbf16>, vector<4x128xbf16>, vector<64x128xf32> -> vector<64x128xf32>
    %12 = arith.addf %5, %11 : vector<64x128xf32>
    %c0_15 = arith.constant 0 : index
    %c0_16 = arith.constant 0 : index
    %c0_17 = arith.constant 0 : index
    %c2 = arith.constant 2 : index
    %c0_18 = arith.constant 0 : index
    %13 = vector.load %arg3[%c0_15, %c0_16, %c0_17, %c2, %c0_18] : memref<1x1x6x18x4xbf16, #tpu.memory_space<vmem>>, vector<1x1x4x16x4xbf16>
    %14 = vector.shape_cast %13 : vector<1x1x4x16x4xbf16> to vector<4x16x4xbf16>
    %15 = vector.shape_cast %14 : vector<4x16x4xbf16> to vector<64x4xbf16>
    %c2_19 = arith.constant 2 : index
    %c0_20 = arith.constant 0 : index
    %c0_21 = arith.constant 0 : index
    %16 = vector.load %arg4[%c2_19, %c0_20, %c0_21] : memref<9x4x128xbf16, #tpu.memory_space<vmem>>, vector<1x4x128xbf16>
    %17 = vector.shape_cast %16 : vector<1x4x128xbf16> to vector<4x128xbf16>
    %cst_22 = arith.constant dense<0.000000e+00> : vector<64x128xf32>
    %18 = tpu.matmul %15, %17, %cst_22 {dimension_numbers = #tpu.dot_dimension_numbers<[1], [0], [0], [1], [0, 0, 1, 1], [], []>} : vector<64x4xbf16>, vector<4x128xbf16>, vector<64x128xf32> -> vector<64x128xf32>
    %19 = arith.addf %12, %18 : vector<64x128xf32>
    %c0_23 = arith.constant 0 : index
    %c0_24 = arith.constant 0 : index
    %c1_25 = arith.constant 1 : index
    %c0_26 = arith.constant 0 : index
    %c0_27 = arith.constant 0 : index
    %20 = vector.load %arg3[%c0_23, %c0_24, %c1_25, %c0_26, %c0_27] : memref<1x1x6x18x4xbf16, #tpu.memory_space<vmem>>, vector<1x1x4x16x4xbf16>
    %21 = vector.shape_cast %20 : vector<1x1x4x16x4xbf16> to vector<4x16x4xbf16>
    %22 = vector.shape_cast %21 : vector<4x16x4xbf16> to vector<64x4xbf16>
    %c3 = arith.constant 3 : index
    %c0_28 = arith.constant 0 : index
    %c0_29 = arith.constant 0 : index
    %23 = vector.load %arg4[%c3, %c0_28, %c0_29] : memref<9x4x128xbf16, #tpu.memory_space<vmem>>, vector<1x4x128xbf16>
    %24 = vector.shape_cast %23 : vector<1x4x128xbf16> to vector<4x128xbf16>
    %cst_30 = arith.constant dense<0.000000e+00> : vector<64x128xf32>
    %25 = tpu.matmul %22, %24, %cst_30 {dimension_numbers = #tpu.dot_dimension_numbers<[1], [0], [0], [1], [0, 0, 1, 1], [], []>} : vector<64x4xbf16>, vector<4x128xbf16>, vector<64x128xf32> -> vector<64x128xf32>
    %26 = arith.addf %19, %25 : vector<64x128xf32>
    %c0_31 = arith.constant 0 : index
    %c0_32 = arith.constant 0 : index
    %c1_33 = arith.constant 1 : index
    %c1_34 = arith.constant 1 : index
    %c0_35 = arith.constant 0 : index
    %27 = vector.load %arg3[%c0_31, %c0_32, %c1_33, %c1_34, %c0_35] : memref<1x1x6x18x4xbf16, #tpu.memory_space<vmem>>, vector<1x1x4x16x4xbf16>
    %28 = vector.shape_cast %27 : vector<1x1x4x16x4xbf16> to vector<4x16x4xbf16>
    %29 = vector.shape_cast %28 : vector<4x16x4xbf16> to vector<64x4xbf16>
    %c4 = arith.constant 4 : index
    %c0_36 = arith.constant 0 : index
    %c0_37 = arith.constant 0 : index
    %30 = vector.load %arg4[%c4, %c0_36, %c0_37] : memref<9x4x128xbf16, #tpu.memory_space<vmem>>, vector<1x4x128xbf16>
    %31 = vector.shape_cast %30 : vector<1x4x128xbf16> to vector<4x128xbf16>
    %cst_38 = arith.constant dense<0.000000e+00> : vector<64x128xf32>
    %32 = tpu.matmul %29, %31, %cst_38 {dimension_numbers = #tpu.dot_dimension_numbers<[1], [0], [0], [1], [0, 0, 1, 1], [], []>} : vector<64x4xbf16>, vector<4x128xbf16>, vector<64x128xf32> -> vector<64x128xf32>
    %33 = arith.addf %26, %32 : vector<64x128xf32>
    %c0_39 = arith.constant 0 : index
    %c0_40 = arith.constant 0 : index
    %c1_41 = arith.constant 1 : index
    %c2_42 = arith.constant 2 : index
    %c0_43 = arith.constant 0 : index
    %34 = vector.load %arg3[%c0_39, %c0_40, %c1_41, %c2_42, %c0_43] : memref<1x1x6x18x4xbf16, #tpu.memory_space<vmem>>, vector<1x1x4x16x4xbf16>
    %35 = vector.shape_cast %34 : vector<1x1x4x16x4xbf16> to vector<4x16x4xbf16>
    %36 = vector.shape_cast %35 : vector<4x16x4xbf16> to vector<64x4xbf16>
    %c5 = arith.constant 5 : index
    %c0_44 = arith.constant 0 : index
    %c0_45 = arith.constant 0 : index
    %37 = vector.load %arg4[%c5, %c0_44, %c0_45] : memref<9x4x128xbf16, #tpu.memory_space<vmem>>, vector<1x4x128xbf16>
    %38 = vector.shape_cast %37 : vector<1x4x128xbf16> to vector<4x128xbf16>
    %cst_46 = arith.constant dense<0.000000e+00> : vector<64x128xf32>
    %39 = tpu.matmul %36, %38, %cst_46 {dimension_numbers = #tpu.dot_dimension_numbers<[1], [0], [0], [1], [0, 0, 1, 1], [], []>} : vector<64x4xbf16>, vector<4x128xbf16>, vector<64x128xf32> -> vector<64x128xf32>
    %40 = arith.addf %33, %39 : vector<64x128xf32>
    %c0_47 = arith.constant 0 : index
    %c0_48 = arith.constant 0 : index
    %c2_49 = arith.constant 2 : index
    %c0_50 = arith.constant 0 : index
    %c0_51 = arith.constant 0 : index
    %41 = vector.load %arg3[%c0_47, %c0_48, %c2_49, %c0_50, %c0_51] : memref<1x1x6x18x4xbf16, #tpu.memory_space<vmem>>, vector<1x1x4x16x4xbf16>
    %42 = vector.shape_cast %41 : vector<1x1x4x16x4xbf16> to vector<4x16x4xbf16>
    %43 = vector.shape_cast %42 : vector<4x16x4xbf16> to vector<64x4xbf16>
    %c6 = arith.constant 6 : index
    %c0_52 = arith.constant 0 : index
    %c0_53 = arith.constant 0 : index
    %44 = vector.load %arg4[%c6, %c0_52, %c0_53] : memref<9x4x128xbf16, #tpu.memory_space<vmem>>, vector<1x4x128xbf16>
    %45 = vector.shape_cast %44 : vector<1x4x128xbf16> to vector<4x128xbf16>
    %cst_54 = arith.constant dense<0.000000e+00> : vector<64x128xf32>
    %46 = tpu.matmul %43, %45, %cst_54 {dimension_numbers = #tpu.dot_dimension_numbers<[1], [0], [0], [1], [0, 0, 1, 1], [], []>} : vector<64x4xbf16>, vector<4x128xbf16>, vector<64x128xf32> -> vector<64x128xf32>
    %47 = arith.addf %40, %46 : vector<64x128xf32>
    %c0_55 = arith.constant 0 : index
    %c0_56 = arith.constant 0 : index
    %c2_57 = arith.constant 2 : index
    %c1_58 = arith.constant 1 : index
    %c0_59 = arith.constant 0 : index
    %48 = vector.load %arg3[%c0_55, %c0_56, %c2_57, %c1_58, %c0_59] : memref<1x1x6x18x4xbf16, #tpu.memory_space<vmem>>, vector<1x1x4x16x4xbf16>
    %49 = vector.shape_cast %48 : vector<1x1x4x16x4xbf16> to vector<4x16x4xbf16>
    %50 = vector.shape_cast %49 : vector<4x16x4xbf16> to vector<64x4xbf16>
    %c7 = arith.constant 7 : index
    %c0_60 = arith.constant 0 : index
    %c0_61 = arith.constant 0 : index
    %51 = vector.load %arg4[%c7, %c0_60, %c0_61] : memref<9x4x128xbf16, #tpu.memory_space<vmem>>, vector<1x4x128xbf16>
    %52 = vector.shape_cast %51 : vector<1x4x128xbf16> to vector<4x128xbf16>
    %cst_62 = arith.constant dense<0.000000e+00> : vector<64x128xf32>
    %53 = tpu.matmul %50, %52, %cst_62 {dimension_numbers = #tpu.dot_dimension_numbers<[1], [0], [0], [1], [0, 0, 1, 1], [], []>} : vector<64x4xbf16>, vector<4x128xbf16>, vector<64x128xf32> -> vector<64x128xf32>
    %54 = arith.addf %47, %53 : vector<64x128xf32>
    %c0_63 = arith.constant 0 : index
    %c0_64 = arith.constant 0 : index
    %c2_65 = arith.constant 2 : index
    %c2_66 = arith.constant 2 : index
    %c0_67 = arith.constant 0 : index
    %55 = vector.load %arg3[%c0_63, %c0_64, %c2_65, %c2_66, %c0_67] : memref<1x1x6x18x4xbf16, #tpu.memory_space<vmem>>, vector<1x1x4x16x4xbf16>
    %56 = vector.shape_cast %55 : vector<1x1x4x16x4xbf16> to vector<4x16x4xbf16>
    %57 = vector.shape_cast %56 : vector<4x16x4xbf16> to vector<64x4xbf16>
    %c8 = arith.constant 8 : index
    %c0_68 = arith.constant 0 : index
    %c0_69 = arith.constant 0 : index
    %58 = vector.load %arg4[%c8, %c0_68, %c0_69] : memref<9x4x128xbf16, #tpu.memory_space<vmem>>, vector<1x4x128xbf16>
    %59 = vector.shape_cast %58 : vector<1x4x128xbf16> to vector<4x128xbf16>
    %cst_70 = arith.constant dense<0.000000e+00> : vector<64x128xf32>
    %60 = tpu.matmul %57, %59, %cst_70 {dimension_numbers = #tpu.dot_dimension_numbers<[1], [0], [0], [1], [0, 0, 1, 1], [], []>} : vector<64x4xbf16>, vector<4x128xbf16>, vector<64x128xf32> -> vector<64x128xf32>
    %61 = arith.addf %54, %60 : vector<64x128xf32>
    %cst_71 = arith.constant dense<0.000000e+00> : vector<128xf32>
    %62 = vector.multi_reduction <add>, %61, %cst_71 [0] : vector<64x128xf32> to vector<128xf32>
    %63 = vector.shape_cast %62 : vector<128xf32> to vector<1x128xf32>
    %64 = arith.mulf %61, %61 : vector<64x128xf32>
    %cst_72 = arith.constant dense<0.000000e+00> : vector<128xf32>
    %65 = vector.multi_reduction <add>, %64, %cst_72 [0] : vector<64x128xf32> to vector<128xf32>
    %66 = vector.shape_cast %65 : vector<128xf32> to vector<1x128xf32>
    %67 = tpu.concatenate %63, %66 in 0 : vector<1x128xf32>, vector<1x128xf32> -> vector<2x128xf32>
    %c0_i32 = arith.constant 0 : i32
    %68 = arith.cmpi eq, %arg2, %c0_i32 : i32
    %69 = arith.extui %68 : i1 to i32
    %c0_i32_73 = arith.constant 0 : i32
    %70 = arith.cmpi ne, %69, %c0_i32_73 : i32
    scf.if %70 {
      %c0_80 = arith.constant 0 : index
      %c0_81 = arith.constant 0 : index
      %c0_82 = arith.constant 0 : index
      %79 = vector.load %arg6[%c0_80, %c0_81, %c0_82] : memref<1x2x128xf32, #tpu.memory_space<vmem>>, vector<1x2x128xf32>
      %80 = vector.shape_cast %79 : vector<1x2x128xf32> to vector<2x128xf32>
      %81 = vector.shape_cast %67 : vector<2x128xf32> to vector<1x2x128xf32>
      tpu.vector_store %arg6[%c0_80, %c0_81, %c0_82], %81 {strides = array<i32>} : memref<1x2x128xf32, #tpu.memory_space<vmem>>, vector<1x2x128xf32>,
    } else {
    }
    %c0_i32_74 = arith.constant 0 : i32
    %71 = arith.cmpi sgt, %arg2, %c0_i32_74 : i32
    %72 = arith.extui %71 : i1 to i32
    %c0_i32_75 = arith.constant 0 : i32
    %73 = arith.cmpi ne, %72, %c0_i32_75 : i32
    scf.if %73 {
      %c0_80 = arith.constant 0 : index
      %c0_81 = arith.constant 0 : index
      %c0_82 = arith.constant 0 : index
      %79 = vector.load %arg6[%c0_80, %c0_81, %c0_82] : memref<1x2x128xf32, #tpu.memory_space<vmem>>, vector<1x2x128xf32>
      %80 = vector.shape_cast %79 : vector<1x2x128xf32> to vector<2x128xf32>
      %81 = arith.addf %80, %67 : vector<2x128xf32>
      %c0_83 = arith.constant 0 : index
      %c0_84 = arith.constant 0 : index
      %c0_85 = arith.constant 0 : index
      %82 = vector.load %arg6[%c0_83, %c0_84, %c0_85] : memref<1x2x128xf32, #tpu.memory_space<vmem>>, vector<1x2x128xf32>
      %83 = vector.shape_cast %82 : vector<1x2x128xf32> to vector<2x128xf32>
      %84 = vector.shape_cast %81 : vector<2x128xf32> to vector<1x2x128xf32>
      tpu.vector_store %arg6[%c0_83, %c0_84, %c0_85], %84 {strides = array<i32>} : memref<1x2x128xf32, #tpu.memory_space<vmem>>, vector<1x2x128xf32>,
    } else {
    }
    %74 = vector.shape_cast %61 : vector<64x128xf32> to vector<4x16x128xf32>
    %75 = arith.truncf %74 : vector<4x16x128xf32> to vector<4x16x128xbf16>
    %c0_76 = arith.constant 0 : index
    %c0_77 = arith.constant 0 : index
    %c0_78 = arith.constant 0 : index
    %c0_79 = arith.constant 0 : index
    %76 = vector.load %arg5[%c0_76, %c0_77, %c0_78, %c0_79] : memref<1x4x16x128xbf16, #tpu.memory_space<vmem>>, vector<1x4x16x128xbf16>
    %77 = vector.shape_cast %76 : vector<1x4x16x128xbf16> to vector<4x16x128xbf16>
    %78 = vector.shape_cast %75 : vector<4x16x128xbf16> to vector<1x4x16x128xbf16>
    tpu.vector_store %arg5[%c0_76, %c0_77, %c0_78, %c0_79], %78 {strides = array<i32>} : memref<1x4x16x128xbf16, #tpu.memory_space<vmem>>, vector<1x4x16x128xbf16>,
    return
  }
  func.func @transform_0(%arg0: i32, %arg1: i32, %arg2: i32) -> (i32, i32, i32, i32, i32) {
    %c0_i32 = arith.constant 0 : i32
    %c0_i32_0 = arith.constant 0 : i32
    %c0_i32_1 = arith.constant 0 : i32
    %c0_i32_2 = arith.constant 0 : i32
    return %arg0, %arg2, %c0_i32, %c0_i32_0, %c0_i32_1 : i32, i32, i32, i32, i32
  }
  func.func @transform_1(%arg0: i32, %arg1: i32, %arg2: i32) -> (i32, i32, i32) {
    %c0_i32 = arith.constant 0 : i32
    %c0_i32_0 = arith.constant 0 : i32
    %c0_i32_1 = arith.constant 0 : i32
    return %c0_i32, %c0_i32_0, %arg1 : i32, i32, i32
  }
  func.func @transform_2(%arg0: i32, %arg1: i32, %arg2: i32) -> (i32, i32, i32, i32) {
    %c0_i32 = arith.constant 0 : i32
    %c0_i32_0 = arith.constant 0 : i32
    return %arg0, %arg2, %c0_i32, %arg1 : i32, i32, i32, i32
  }
  func.func @transform_3(%arg0: i32, %arg1: i32, %arg2: i32) -> (i32, i32, i32) {
    %c0_i32 = arith.constant 0 : i32
    %c0_i32_0 = arith.constant 0 : i32
    return %arg0, %c0_i32, %arg1 : i32, i32, i32
  }
}

module attributes {stable_mosaic.version = 11 : i64} {
  func.func @_bn_relu_kernel(%arg0: i32, %arg1: i32, %arg2: memref<512x128xbf16, #tpu.memory_space<vmem>>, %arg3: memref<1x128xf32, #tpu.memory_space<vmem>>, %arg4: memref<1x128xf32, #tpu.memory_space<vmem>>, %arg5: memref<512x128xf32, #tpu.memory_space<vmem>>) attributes {dimension_semantics = [#tpu.dimension_semantics<parallel>, #tpu.dimension_semantics<parallel>], iteration_bounds = array<i64: 1, 1>, scalar_prefetch = 0 : i64, scratch_operands = 0 : i64, tpu.core_type = #tpu.core_type<tc>, window_params = [{transform_indices = @transform_0, window_bounds = array<i64: 512, 128>}, {transform_indices = @transform_1, window_bounds = array<i64: 1, 128>}, {transform_indices = @transform_2, window_bounds = array<i64: 1, 128>}, {transform_indices = @transform_3, window_bounds = array<i64: 512, 128>}]} {
    %c0 = arith.constant 0 : index
    %c0_0 = arith.constant 0 : index
    %0 = vector.load %arg2[%c0, %c0_0] : memref<512x128xbf16, #tpu.memory_space<vmem>>, vector<512x128xbf16>
    %1 = arith.extf %0 : vector<512x128xbf16> to vector<512x128xf32>
    %c0_1 = arith.constant 0 : index
    %c0_2 = arith.constant 0 : index
    %2 = vector.load %arg3[%c0_1, %c0_2] : memref<1x128xf32, #tpu.memory_space<vmem>>, vector<1x128xf32>
    %3 = vector.broadcast %2 : vector<1x128xf32> to vector<512x128xf32>
    %4 = arith.mulf %1, %3 : vector<512x128xf32>
    %c0_3 = arith.constant 0 : index
    %c0_4 = arith.constant 0 : index
    %5 = vector.load %arg4[%c0_3, %c0_4] : memref<1x128xf32, #tpu.memory_space<vmem>>, vector<1x128xf32>
    %6 = vector.broadcast %5 : vector<1x128xf32> to vector<512x128xf32>
    %7 = arith.addf %4, %6 : vector<512x128xf32>
    %cst = arith.constant 0.000000e+00 : f32
    %8 = vector.broadcast %cst : f32 to vector<512x128xf32>
    %9 = arith.maximumf %7, %8 : vector<512x128xf32>
    %c0_5 = arith.constant 0 : index
    %c0_6 = arith.constant 0 : index
    %10 = vector.load %arg5[%c0_5, %c0_6] : memref<512x128xf32, #tpu.memory_space<vmem>>, vector<512x128xf32>
    tpu.vector_store %arg5[%c0_5, %c0_6], %9 {strides = array<i32>} : memref<512x128xf32, #tpu.memory_space<vmem>>, vector<512x128xf32>,
    return
  }
  func.func @transform_0(%arg0: i32, %arg1: i32) -> (i32, i32) {
    %c0_i32 = arith.constant 0 : i32
    return %arg0, %arg1 : i32, i32
  }
  func.func @transform_1(%arg0: i32, %arg1: i32) -> (i32, i32) {
    %c0_i32 = arith.constant 0 : i32
    %c0_i32_0 = arith.constant 0 : i32
    return %c0_i32, %arg1 : i32, i32
  }
  func.func @transform_2(%arg0: i32, %arg1: i32) -> (i32, i32) {
    %c0_i32 = arith.constant 0 : i32
    %c0_i32_0 = arith.constant 0 : i32
    return %c0_i32, %arg1 : i32, i32
  }
  func.func @transform_3(%arg0: i32, %arg1: i32) -> (i32, i32) {
    %c0_i32 = arith.constant 0 : i32
    return %arg0, %arg1 : i32, i32
  }
}

</mosaic_0001>

<bundles_post_ra>
// kernel: conv_block.3
= control target key start
LH: loop header
LB: loop body
LE: loop exit
PB: predicated region body
PF: predicated region fallthrough
CT: control target
= control target key end

     0   :  { %8 = vsyncpa [#allocation3], 0  ;;  %s946_s0 = inlined_call_operand.hbm [shape: bf16[512,128], index: 0, kind: input, shape index: {}]   ;;  %s947_s1 = inlined_call_operand.hbm [shape: f32[1,128], index: 1, kind: input, shape index: {}]   ;;  %s948_s2 = inlined_call_operand.hbm [shape: f32[1,128], index: 2, kind: input, shape index: {}]   ;;  %s949_s3 = inlined_call_operand.hbm [shape: f32[512,128], index: 3, kind: output, shape index: {}]  }
   0x1   :  { %9 = vsyncpa [#allocation6], 0 }
   0x2   :  { %10 = vsyncpa [#allocation4], 0  ;;  %s731_s12 = smov [#allocation5]   ;;  %s732_s14 = smov [#allocation2]  }
   0x3   :  { %s29_s13 = sshll.u32 %s731_s12, 4  ;;  %s16_s15 = sshll.u32 %s732_s14, 4  ;;  %s30_s13 = int_to_ptr.vmem [resolvable:$true] %s29_s13  ;;  %s759_s15 = int_to_ptr.vmem [resolvable:$true] %s16_s15 }
   0x4   :  { %s637_s18 = scalar_lea.hbm %s947_s1, 16 }
   0x5   :  { %p638_p0 = scmp.ne.s32.totalorder %s947_s1, %s637_s18  ;;  %p641_p1 = scmp.lt.u32.totalorder %s637_s18, %s947_s1 }
   0x7   :  { %p643_p2 = pnand %p641_p1, %p638_p0 }
   0x9   :  { %646 = shalt.err (!%p643_p2)
}
   0xa   :  { %s647_s23 = scalar_lea.vmem %s30_s13, 16  ;;  %s651_s24 = scalar_lea.vmem %s30_s13, 32 }
   0xb   :  { %p648_p3 = scmp.ne.s32.totalorder %s30_s13, %s647_s23  ;;  %p652_p4 = scmp.lt.s32.totalorder %s30_s13, %s30_s13 }
   0xc   :  { %p653_p5 = scmp.lt.s32.totalorder %s651_s24, %s647_s23 }
   0xe   :  { %p654_p6 = por %p653_p5, %p652_p4 }
  0x10   :  { %p655_p7 = pnand %p654_p6, %p648_p3 }
  0x12   :  { %658 = shalt.err (!%p655_p7)
}
  0x13   :  { %32 = dma.hbm_to_vmem [thread:$0]  %s947_s1, 16, %s30_s13, [#allocation6]  }
  0x14   :  { %s659_s29 = scalar_lea.hbm %s946_s0, 4096 }
  0x15   :  { %p660_p8 = scmp.ne.s32.totalorder %s946_s0, %s659_s29  ;;  %p663_p9 = scmp.lt.u32.totalorder %s659_s29, %s946_s0 }
  0x17   :  { %p665_p10 = pnand %p663_p9, %p660_p8 }
  0x19   :  { %668 = shalt.err (!%p665_p10)
}
  0x1a   :  { %s669_s7 = scalar_lea.vmem %s759_s15, 4096  ;;  %p674_p12 = scmp.lt.s32.totalorder %s759_s15, %s759_s15 }
  0x1b   :  { %p670_p11 = scmp.ne.s32.totalorder %s759_s15, %s669_s7  ;;  %p675_p13 = scmp.lt.s32.totalorder %s669_s7, %s669_s7 }
  0x1d   :  { %p676_p0 = por %p675_p13, %p674_p12 }
  0x1f   :  { %p677_p1 = pnand %p676_p0, %p670_p11 }
  0x21   :  { %680 = shalt.err (!%p677_p1)
}
  0x22   :  { %s733_s1 = smov 64   ;;  %s734_s8 = smov 4  }
  0x23   :  { %22 = dma.hbm_to_vmem [thread:$0]  %s946_s0, 4096, %s759_s15, [#allocation3], %s733_s1, %s733_s1, %s734_s8  }
  0x24   :  { %s735_s11 = smov [#allocation7]   ;;  %s681_s16 = scalar_lea.hbm %s948_s2, 16 }
  0x25   :  { %s39_s12 = sshll.u32 %s735_s11, 4  ;;  %p682_p2 = scmp.ne.s32.totalorder %s948_s2, %s681_s16  ;;  %s40_s12 = int_to_ptr.vmem [resolvable:$true] %s39_s12 }
  0x26   :  { %p685_p3 = scmp.lt.u32.totalorder %s681_s16, %s948_s2 }
  0x28   :  { %p687_p4 = pnand %p685_p3, %p682_p2 }
  0x2a   :  { %690 = shalt.err (!%p687_p4)
}
  0x2b   :  { %s691_s21 = scalar_lea.vmem %s40_s12, 16  ;;  %s695_s0 = scalar_lea.vmem %s40_s12, 32 }
  0x2c   :  { %p692_p5 = scmp.ne.s32.totalorder %s40_s12, %s691_s21  ;;  %p696_p6 = scmp.lt.s32.totalorder %s40_s12, %s40_s12 }
  0x2d   :  { %p697_p7 = scmp.lt.s32.totalorder %s695_s0, %s691_s21 }
  0x2f   :  { %p698_p8 = por %p697_p7, %p696_p6 }
  0x31   :  { %p699_p9 = pnand %p698_p8, %p692_p5 }
  0x33   :  { %702 = shalt.err (!%p699_p9)
}
  0x34   :  { %42 = dma.hbm_to_vmem [thread:$0]  %s948_s2, 16, %s40_s12, [#allocation6]  }
  0x35   :  { %725 = dma.done.wait [#allocation3], 4096  }
  0x36   :  { %726 = vsyncadd [#allocation3], 4294963200 }
  0x37   :  { %727 = dma.done.wait [#allocation6], 32  }
  0x38   :  { %728 = vsyncadd [#allocation6], 4294967264  ;;  %v471_v0 = vld [vmem:[#allocation2] sm:$0xff]   ;;  %v598_v4 = vld [vmem:[#allocation2 + $0x8] sm:$0xff]   ;;  %s736_s2 = smov [#allocation8]  }
  0x39   :  { %v802_v1 = vld [vmem:[#allocation5] ss:$0 sm:$0xff]  ;;  %v472_v2 = vunpack.c.l.bf16 %v471_v0  ;;  %v473_v3 = vunpack.c.h.bf16 %v471_v0  ;;  %v599_v5 = vld [vmem:[#allocation2 + $0x10] sm:$0xff]   ;;  %v600_v6 = vld [vmem:[#allocation2 + $0x18] sm:$0xff]   ;;  %v476_v8 = vunpack.c.l.bf16 %v598_v4  ;;  %v477_v9 = vunpack.c.h.bf16 %v598_v4  ;;  %s455_s23 = sshll.u32 %s736_s2, 4  ;;  %s456_s23 = int_to_ptr.vmem [resolvable:$true] %s455_s23 }
  0x3a   :  { %v804_v7 = vld [vmem:[#allocation7] ss:$0 sm:$0xff]  ;;  %v480_v10 = vunpack.c.l.bf16 %v599_v5  ;;  %v481_v11 = vunpack.c.h.bf16 %v599_v5  ;;  %v484_v14 = vunpack.c.l.bf16 %v600_v6  ;;  %v485_v15 = vunpack.c.h.bf16 %v600_v6  ;;  %v602_v33 = vld [vmem:[#allocation2 + $0x28] sm:$0xff]   ;;  %v603_v34 = vld [vmem:[#allocation2 + $0x30] sm:$0xff]   ;;  %s703_s24 = scalar_lea.vmem %s456_s23, 8192  ;;  %p708_p11 = scmp.lt.s32.totalorder %s456_s23, %s456_s23 }
  0x3b   :  { %v187_v12 = vmul.f32 %v472_v2, %v802_v1  ;;  %v188_v13 = vmul.f32 %v473_v3, %v802_v1  ;;  %v189_v16 = vmul.f32 %v476_v8, %v802_v1  ;;  %v190_v17 = vmul.f32 %v477_v9, %v802_v1  ;;  %v601_v28 = vld [vmem:[#allocation2 + $0x20] sm:$0xff]   ;;  %v604_v39 = vld [vmem:[#allocation2 + $0x38] sm:$0xff]   ;;  %v606_v6 = vld [vmem:[#allocation2 + $0x48] sm:$0xff]   ;;  %p704_p10 = scmp.ne.s32.totalorder %s456_s23, %s703_s24  ;;  %p709_p12 = scmp.lt.s32.totalorder %s703_s24, %s703_s24 }
  0x3c   :  { %v191_v18 = vmul.f32 %v480_v10, %v802_v1  ;;  %v192_v19 = vmul.f32 %v481_v11, %v802_v1  ;;  %v193_v22 = vmul.f32 %v484_v14, %v802_v1  ;;  %v194_v23 = vmul.f32 %v485_v15, %v802_v1  ;;  %v605_v0 = vld [vmem:[#allocation2 + $0x40] sm:$0xff]   ;;  %v607_v8 = vld [vmem:[#allocation2 + $0x50] sm:$0xff]  }
  0x3d   :  { %v258_v20 = vadd.f32 %v804_v7, %v187_v12  ;;  %v259_v21 = vadd.f32 %v804_v7, %v188_v13  ;;  %v260_v24 = vadd.f32 %v804_v7, %v189_v16  ;;  %v261_v25 = vadd.f32 %v804_v7, %v190_v17  ;;  %v608_v13 = vld [vmem:[#allocation2 + $0x58] sm:$0xff]   ;;  %p710_p13 = por %p709_p12, %p708_p11 }
  0x3e   :  { %v262_v26 = vadd.f32 %v804_v7, %v191_v18  ;;  %v263_v27 = vadd.f32 %v804_v7, %v192_v19  ;;  %v264_v31 = vadd.f32 %v804_v7, %v193_v22  ;;  %v265_v32 = vadd.f32 %v804_v7, %v194_v23 }
  0x3f   :  { %v322_v29 = vmax.f32 %v258_v20, 0.0  ;;  %v323_v30 = vmax.f32 %v259_v21, 0.0  ;;  %v324_v35 = vmax.f32 %v260_v24, 0.0  ;;  %v325_v36 = vmax.f32 %v261_v25, 0.0  ;;  %p711_p0 = pnand %p710_p13, %p704_p10 }
  0x40   :  { %v326_v37 = vmax.f32 %v262_v26, 0.0  ;;  %v327_v38 = vmax.f32 %v263_v27, 0.0  ;;  %v328_v40 = vmax.f32 %v264_v31, 0.0  ;;  %v329_v41 = vmax.f32 %v265_v32, 0.0 }
  0x41   :  { %386 = vst [vmem:[#allocation8] sm:$0xff] %v322_v29  ;;  %387 = vst [vmem:[#allocation8 + $0x8] sm:$0xff] %v323_v30  ;;  %v488_v42 = vunpack.c.l.bf16 %v601_v28  ;;  %v489_v43 = vunpack.c.h.bf16 %v601_v28  ;;  %v492_v44 = vunpack.c.l.bf16 %v602_v33  ;;  %v493_v45 = vunpack.c.h.bf16 %v602_v33 }
  0x42   :  { %388 = vst [vmem:[#allocation8 + $0x10] sm:$0xff] %v324_v35  ;;  %389 = vst [vmem:[#allocation8 + $0x18] sm:$0xff] %v325_v36  ;;  %v496_v46 = vunpack.c.l.bf16 %v603_v34  ;;  %v497_v47 = vunpack.c.h.bf16 %v603_v34  ;;  %v500_v50 = vunpack.c.l.bf16 %v604_v39  ;;  %v501_v51 = vunpack.c.h.bf16 %v604_v39 }
  0x43   :  { %390 = vst [vmem:[#allocation8 + $0x20] sm:$0xff] %v326_v37  ;;  %391 = vst [vmem:[#allocation8 + $0x28] sm:$0xff] %v327_v38  ;;  %v195_v48 = vmul.f32 %v488_v42, %v802_v1  ;;  %v196_v49 = vmul.f32 %v489_v43, %v802_v1  ;;  %v197_v52 = vmul.f32 %v492_v44, %v802_v1  ;;  %v504_v16 = vunpack.c.l.bf16 %v605_v0  ;;  %v609_v38 = vld [vmem:[#allocation2 + $0x60] sm:$0xff]   ;;  %v610_v43 = vld [vmem:[#allocation2 + $0x68] sm:$0xff]  }
  0x44   :  { %392 = vst [vmem:[#allocation8 + $0x30] sm:$0xff] %v328_v40  ;;  %393 = vst [vmem:[#allocation8 + $0x38] sm:$0xff] %v329_v41  ;;  %v198_v53 = vmul.f32 %v493_v45, %v802_v1  ;;  %v199_v54 = vmul.f32 %v496_v46, %v802_v1  ;;  %v200_v55 = vmul.f32 %v497_v47, %v802_v1  ;;  %v505_v17 = vunpack.c.h.bf16 %v605_v0  ;;  %v611_v44 = vld [vmem:[#allocation2 + $0x70] sm:$0xff]  }
  0x45   :  { %v266_v56 = vadd.f32 %v804_v7, %v195_v48  ;;  %v267_v57 = vadd.f32 %v804_v7, %v196_v49  ;;  %v201_v58 = vmul.f32 %v500_v50, %v802_v1  ;;  %v202_v59 = vmul.f32 %v501_v51, %v802_v1  ;;  %v612_v49 = vld [vmem:[#allocation2 + $0x78] sm:$0xff]  }
  0x46   :  { %v268_v60 = vadd.f32 %v804_v7, %v197_v52  ;;  %v269_v61 = vadd.f32 %v804_v7, %v198_v53  ;;  %v270_v62 = vadd.f32 %v804_v7, %v199_v54  ;;  %v271_v63 = vadd.f32 %v804_v7, %v200_v55 }
  0x47   :  { %v330_v2 = vmax.f32 %v266_v56, 0.0  ;;  %v331_v3 = vmax.f32 %v267_v57, 0.0  ;;  %v272_v4 = vadd.f32 %v804_v7, %v201_v58  ;;  %v273_v5 = vadd.f32 %v804_v7, %v202_v59 }
  0x48   :  { %v332_v9 = vmax.f32 %v268_v60, 0.0  ;;  %v333_v10 = vmax.f32 %v269_v61, 0.0  ;;  %v334_v11 = vmax.f32 %v270_v62, 0.0  ;;  %v335_v12 = vmax.f32 %v271_v63, 0.0 }
  0x49   :  { %394 = vst [vmem:[#allocation8 + $0x40] sm:$0xff] %v330_v2  ;;  %395 = vst [vmem:[#allocation8 + $0x48] sm:$0xff] %v331_v3  ;;  %v336_v14 = vmax.f32 %v272_v4, 0.0  ;;  %v337_v15 = vmax.f32 %v273_v5, 0.0  ;;  %v508_v18 = vunpack.c.l.bf16 %v606_v6  ;;  %v509_v19 = vunpack.c.h.bf16 %v606_v6 }
  0x4a   :  { %396 = vst [vmem:[#allocation8 + $0x50] sm:$0xff] %v332_v9  ;;  %397 = vst [vmem:[#allocation8 + $0x58] sm:$0xff] %v333_v10  ;;  %v512_v20 = vunpack.c.l.bf16 %v607_v8  ;;  %v513_v21 = vunpack.c.h.bf16 %v607_v8  ;;  %v203_v22 = vmul.f32 %v504_v16, %v802_v1  ;;  %v204_v23 = vmul.f32 %v505_v17, %v802_v1  ;;  %v614_v17 = vld [vmem:[#allocation2 + $0x88] sm:$0xff]  }
  0x4b   :  { %398 = vst [vmem:[#allocation8 + $0x60] sm:$0xff] %v334_v11  ;;  %399 = vst [vmem:[#allocation8 + $0x68] sm:$0xff] %v335_v12  ;;  %v516_v24 = vunpack.c.l.bf16 %v608_v13  ;;  %v517_v25 = vunpack.c.h.bf16 %v608_v13  ;;  %v205_v26 = vmul.f32 %v508_v18, %v802_v1  ;;  %v206_v27 = vmul.f32 %v509_v19, %v802_v1  ;;  %v613_v12 = vld [vmem:[#allocation2 + $0x80] sm:$0xff]   ;;  %v615_v18 = vld [vmem:[#allocation2 + $0x90] sm:$0xff]  }
  0x4c   :  { %400 = vst [vmem:[#allocation8 + $0x70] sm:$0xff] %v336_v14  ;;  %401 = vst [vmem:[#allocation8 + $0x78] sm:$0xff] %v337_v15  ;;  %v207_v28 = vmul.f32 %v512_v20, %v802_v1  ;;  %v208_v29 = vmul.f32 %v513_v21, %v802_v1  ;;  %v274_v30 = vadd.f32 %v804_v7, %v203_v22  ;;  %v520_v52 = vunpack.c.l.bf16 %v609_v38 }
  0x4d   :  { %v275_v31 = vadd.f32 %v804_v7, %v204_v23  ;;  %v209_v32 = vmul.f32 %v516_v24, %v802_v1  ;;  %v210_v33 = vmul.f32 %v517_v25, %v802_v1  ;;  %v276_v34 = vadd.f32 %v804_v7, %v205_v26  ;;  %v616_v23 = vld [vmem:[#allocation2 + $0x98] sm:$0xff]  }
  0x4e   :  { %v277_v35 = vadd.f32 %v804_v7, %v206_v27  ;;  %v278_v36 = vadd.f32 %v804_v7, %v207_v28  ;;  %v279_v37 = vadd.f32 %v804_v7, %v208_v29  ;;  %v338_v39 = vmax.f32 %v274_v30, 0.0 }
  0x4f   :  { %v339_v40 = vmax.f32 %v275_v31, 0.0  ;;  %v280_v41 = vadd.f32 %v804_v7, %v209_v32  ;;  %v281_v42 = vadd.f32 %v804_v7, %v210_v33  ;;  %v340_v45 = vmax.f32 %v276_v34, 0.0 }
  0x50   :  { %v341_v46 = vmax.f32 %v277_v35, 0.0  ;;  %v342_v47 = vmax.f32 %v278_v36, 0.0  ;;  %v343_v48 = vmax.f32 %v279_v37, 0.0  ;;  %402 = vst [vmem:[#allocation8 + $0x80] sm:$0xff] %v338_v39  ;;  %v521_v53 = vunpack.c.h.bf16 %v609_v38 }
  0x51   :  { %403 = vst [vmem:[#allocation8 + $0x88] sm:$0xff] %v339_v40  ;;  %v344_v50 = vmax.f32 %v280_v41, 0.0  ;;  %v345_v51 = vmax.f32 %v281_v42, 0.0  ;;  %404 = vst [vmem:[#allocation8 + $0x90] sm:$0xff] %v340_v45  ;;  %v524_v54 = vunpack.c.l.bf16 %v610_v43  ;;  %v525_v55 = vunpack.c.h.bf16 %v610_v43 }
  0x52   :  { %405 = vst [vmem:[#allocation8 + $0x98] sm:$0xff] %v341_v46  ;;  %406 = vst [vmem:[#allocation8 + $0xa0] sm:$0xff] %v342_v47  ;;  %v528_v56 = vunpack.c.l.bf16 %v611_v44  ;;  %v529_v57 = vunpack.c.h.bf16 %v611_v44  ;;  %v211_v58 = vmul.f32 %v520_v52, %v802_v1  ;;  %v212_v59 = vmul.f32 %v521_v53, %v802_v1  ;;  %v618_v53 = vld [vmem:[#allocation2 + $0xa8] sm:$0xff]  }
  0x53   :  { %407 = vst [vmem:[#allocation8 + $0xa8] sm:$0xff] %v343_v48  ;;  %408 = vst [vmem:[#allocation8 + $0xb0] sm:$0xff] %v344_v50  ;;  %v532_v60 = vunpack.c.l.bf16 %v612_v49  ;;  %v533_v61 = vunpack.c.h.bf16 %v612_v49  ;;  %v213_v62 = vmul.f32 %v524_v54, %v802_v1  ;;  %v214_v63 = vmul.f32 %v525_v55, %v802_v1  ;;  %v617_v48 = vld [vmem:[#allocation2 + $0xa0] sm:$0xff]   ;;  %v619_v54 = vld [vmem:[#allocation2 + $0xb0] sm:$0xff]  }
  0x54   :  { %409 = vst [vmem:[#allocation8 + $0xb8] sm:$0xff] %v345_v51  ;;  %v215_v0 = vmul.f32 %v528_v56, %v802_v1  ;;  %v216_v2 = vmul.f32 %v529_v57, %v802_v1  ;;  %v282_v3 = vadd.f32 %v804_v7, %v211_v58  ;;  %v283_v4 = vadd.f32 %v804_v7, %v212_v59  ;;  %v620_v59 = vld [vmem:[#allocation2 + $0xb8] sm:$0xff]  }
  0x55   :  { %v217_v5 = vmul.f32 %v532_v60, %v802_v1  ;;  %v218_v6 = vmul.f32 %v533_v61, %v802_v1  ;;  %v284_v8 = vadd.f32 %v804_v7, %v213_v62  ;;  %v285_v9 = vadd.f32 %v804_v7, %v214_v63 }
  0x56   :  { %v286_v10 = vadd.f32 %v804_v7, %v215_v0  ;;  %v287_v11 = vadd.f32 %v804_v7, %v216_v2  ;;  %v346_v13 = vmax.f32 %v282_v3, 0.0  ;;  %v347_v14 = vmax.f32 %v283_v4, 0.0 }
  0x57   :  { %v288_v15 = vadd.f32 %v804_v7, %v217_v5  ;;  %v289_v16 = vadd.f32 %v804_v7, %v218_v6  ;;  %v348_v19 = vmax.f32 %v284_v8, 0.0  ;;  %v349_v20 = vmax.f32 %v285_v9, 0.0 }
  0x58   :  { %v350_v21 = vmax.f32 %v286_v10, 0.0  ;;  %v351_v22 = vmax.f32 %v287_v11, 0.0  ;;  %410 = vst [vmem:[#allocation8 + $0xc0] sm:$0xff] %v346_v13  ;;  %411 = vst [vmem:[#allocation8 + $0xc8] sm:$0xff] %v347_v14  ;;  %v536_v26 = vunpack.c.l.bf16 %v613_v12  ;;  %v537_v27 = vunpack.c.h.bf16 %v613_v12 }
  0x59   :  { %v352_v24 = vmax.f32 %v288_v15, 0.0  ;;  %v353_v25 = vmax.f32 %v289_v16, 0.0  ;;  %412 = vst [vmem:[#allocation8 + $0xd0] sm:$0xff] %v348_v19  ;;  %413 = vst [vmem:[#allocation8 + $0xd8] sm:$0xff] %v349_v20  ;;  %v540_v28 = vunpack.c.l.bf16 %v614_v17  ;;  %v541_v29 = vunpack.c.h.bf16 %v614_v17 }
  0x5a   :  { %414 = vst [vmem:[#allocation8 + $0xe0] sm:$0xff] %v350_v21  ;;  %415 = vst [vmem:[#allocation8 + $0xe8] sm:$0xff] %v351_v22  ;;  %v544_v30 = vunpack.c.l.bf16 %v615_v18  ;;  %v545_v31 = vunpack.c.h.bf16 %v615_v18  ;;  %v219_v32 = vmul.f32 %v536_v26, %v802_v1  ;;  %v220_v33 = vmul.f32 %v537_v27, %v802_v1  ;;  %v621_v22 = vld [vmem:[#allocation2 + $0xc0] sm:$0xff]   ;;  %v622_v27 = vld [vmem:[#allocation2 + $0xc8] sm:$0xff]  }
  0x5b   :  { %416 = vst [vmem:[#allocation8 + $0xf0] sm:$0xff] %v352_v24  ;;  %417 = vst [vmem:[#allocation8 + $0xf8] sm:$0xff] %v353_v25  ;;  %v548_v34 = vunpack.c.l.bf16 %v616_v23  ;;  %v549_v35 = vunpack.c.h.bf16 %v616_v23  ;;  %v221_v36 = vmul.f32 %v540_v28, %v802_v1  ;;  %v222_v37 = vmul.f32 %v541_v29, %v802_v1  ;;  %v623_v28 = vld [vmem:[#allocation2 + $0xd0] sm:$0xff]  }
  0x5c   :  { %v223_v38 = vmul.f32 %v544_v30, %v802_v1  ;;  %v224_v39 = vmul.f32 %v545_v31, %v802_v1  ;;  %v290_v40 = vadd.f32 %v804_v7, %v219_v32  ;;  %v291_v41 = vadd.f32 %v804_v7, %v220_v33  ;;  %v624_v33 = vld [vmem:[#allocation2 + $0xd8] sm:$0xff]  }
  0x5d   :  { %v225_v42 = vmul.f32 %v548_v34, %v802_v1  ;;  %v226_v43 = vmul.f32 %v549_v35, %v802_v1  ;;  %v292_v44 = vadd.f32 %v804_v7, %v221_v36  ;;  %v293_v45 = vadd.f32 %v804_v7, %v222_v37 }
  0x5e   :  { %v294_v46 = vadd.f32 %v804_v7, %v223_v38  ;;  %v295_v47 = vadd.f32 %v804_v7, %v224_v39  ;;  %v354_v49 = vmax.f32 %v290_v40, 0.0  ;;  %v355_v50 = vmax.f32 %v291_v41, 0.0 }
  0x5f   :  { %v296_v51 = vadd.f32 %v804_v7, %v225_v42  ;;  %v297_v52 = vadd.f32 %v804_v7, %v226_v43  ;;  %v356_v55 = vmax.f32 %v292_v44, 0.0  ;;  %v357_v56 = vmax.f32 %v293_v45, 0.0 }
  0x60   :  { %v358_v57 = vmax.f32 %v294_v46, 0.0  ;;  %v359_v58 = vmax.f32 %v295_v47, 0.0  ;;  %418 = vst [vmem:[#allocation8 + $0x100] sm:$0xff] %v354_v49  ;;  %419 = vst [vmem:[#allocation8 + $0x108] sm:$0xff] %v355_v50  ;;  %v552_v62 = vunpack.c.l.bf16 %v617_v48  ;;  %v553_v63 = vunpack.c.h.bf16 %v617_v48 }
  0x61   :  { %v360_v60 = vmax.f32 %v296_v51, 0.0  ;;  %v361_v61 = vmax.f32 %v297_v52, 0.0  ;;  %420 = vst [vmem:[#allocation8 + $0x110] sm:$0xff] %v356_v55  ;;  %421 = vst [vmem:[#allocation8 + $0x118] sm:$0xff] %v357_v56  ;;  %v556_v0 = vunpack.c.l.bf16 %v618_v53  ;;  %v557_v2 = vunpack.c.h.bf16 %v618_v53 }
  0x62   :  { %422 = vst [vmem:[#allocation8 + $0x120] sm:$0xff] %v358_v57  ;;  %423 = vst [vmem:[#allocation8 + $0x128] sm:$0xff] %v359_v58  ;;  %v560_v3 = vunpack.c.l.bf16 %v619_v54  ;;  %v561_v4 = vunpack.c.h.bf16 %v619_v54  ;;  %v227_v5 = vmul.f32 %v552_v62, %v802_v1  ;;  %v228_v6 = vmul.f32 %v553_v63, %v802_v1  ;;  %v625_v58 = vld [vmem:[#allocation2 + $0xe0] sm:$0xff]   ;;  %v626_v63 = vld [vmem:[#allocation2 + $0xe8] sm:$0xff]  }
  0x63   :  { %424 = vst [vmem:[#allocation8 + $0x130] sm:$0xff] %v360_v60  ;;  %425 = vst [vmem:[#allocation8 + $0x138] sm:$0xff] %v361_v61  ;;  %v564_v8 = vunpack.c.l.bf16 %v620_v59  ;;  %v565_v9 = vunpack.c.h.bf16 %v620_v59  ;;  %v229_v10 = vmul.f32 %v556_v0, %v802_v1  ;;  %v230_v11 = vmul.f32 %v557_v2, %v802_v1  ;;  %v627_v0 = vld [vmem:[#allocation2 + $0xf0] sm:$0xff]  }
  0x64   :  { %v231_v12 = vmul.f32 %v560_v3, %v802_v1  ;;  %v232_v13 = vmul.f32 %v561_v4, %v802_v1  ;;  %v298_v14 = vadd.f32 %v804_v7, %v227_v5  ;;  %v299_v15 = vadd.f32 %v804_v7, %v228_v6  ;;  %v628_v6 = vld [vmem:[#allocation2 + $0xf8] sm:$0xff]  }
  0x65   :  { %v233_v16 = vmul.f32 %v564_v8, %v802_v1  ;;  %v234_v17 = vmul.f32 %v565_v9, %v802_v1  ;;  %v300_v18 = vadd.f32 %v804_v7, %v229_v10  ;;  %v301_v19 = vadd.f32 %v804_v7, %v230_v11 }
  0x66   :  { %v302_v20 = vadd.f32 %v804_v7, %v231_v12  ;;  %v303_v21 = vadd.f32 %v804_v7, %v232_v13  ;;  %v362_v23 = vmax.f32 %v298_v14, 0.0  ;;  %v363_v24 = vmax.f32 %v299_v15, 0.0 }
  0x67   :  { %v304_v25 = vadd.f32 %v804_v7, %v233_v16  ;;  %v305_v26 = vadd.f32 %v804_v7, %v234_v17  ;;  %v364_v29 = vmax.f32 %v300_v18, 0.0  ;;  %v365_v30 = vmax.f32 %v301_v19, 0.0 }
  0x68   :  { %v366_v31 = vmax.f32 %v302_v20, 0.0  ;;  %v367_v32 = vmax.f32 %v303_v21, 0.0  ;;  %426 = vst [vmem:[#allocation8 + $0x140] sm:$0xff] %v362_v23  ;;  %427 = vst [vmem:[#allocation8 + $0x148] sm:$0xff] %v363_v24  ;;  %v568_v36 = vunpack.c.l.bf16 %v621_v22  ;;  %v569_v37 = vunpack.c.h.bf16 %v621_v22 }
  0x69   :  { %v368_v34 = vmax.f32 %v304_v25, 0.0  ;;  %v369_v35 = vmax.f32 %v305_v26, 0.0  ;;  %428 = vst [vmem:[#allocation8 + $0x150] sm:$0xff] %v364_v29  ;;  %429 = vst [vmem:[#allocation8 + $0x158] sm:$0xff] %v365_v30  ;;  %v572_v38 = vunpack.c.l.bf16 %v622_v27  ;;  %v573_v39 = vunpack.c.h.bf16 %v622_v27 }
  0x6a   :  { %430 = vst [vmem:[#allocation8 + $0x160] sm:$0xff] %v366_v31  ;;  %431 = vst [vmem:[#allocation8 + $0x168] sm:$0xff] %v367_v32  ;;  %v576_v40 = vunpack.c.l.bf16 %v623_v28  ;;  %v577_v41 = vunpack.c.h.bf16 %v623_v28  ;;  %v235_v42 = vmul.f32 %v568_v36, %v802_v1  ;;  %v236_v43 = vmul.f32 %v569_v37, %v802_v1 }
  0x6b   :  { %432 = vst [vmem:[#allocation8 + $0x170] sm:$0xff] %v368_v34  ;;  %433 = vst [vmem:[#allocation8 + $0x178] sm:$0xff] %v369_v35  ;;  %v580_v44 = vunpack.c.l.bf16 %v624_v33  ;;  %v581_v45 = vunpack.c.h.bf16 %v624_v33  ;;  %v237_v46 = vmul.f32 %v572_v38, %v802_v1  ;;  %v238_v47 = vmul.f32 %v573_v39, %v802_v1 }
  0x6c   :  { %v239_v48 = vmul.f32 %v576_v40, %v802_v1  ;;  %v240_v49 = vmul.f32 %v577_v41, %v802_v1  ;;  %v306_v50 = vadd.f32 %v804_v7, %v235_v42  ;;  %v307_v51 = vadd.f32 %v804_v7, %v236_v43 }
  0x6d   :  { %v241_v52 = vmul.f32 %v580_v44, %v802_v1  ;;  %v242_v53 = vmul.f32 %v581_v45, %v802_v1  ;;  %v308_v54 = vadd.f32 %v804_v7, %v237_v46  ;;  %v309_v55 = vadd.f32 %v804_v7, %v238_v47 }
  0x6e   :  { %v310_v56 = vadd.f32 %v804_v7, %v239_v48  ;;  %v311_v57 = vadd.f32 %v804_v7, %v240_v49  ;;  %v370_v59 = vmax.f32 %v306_v50, 0.0  ;;  %v371_v60 = vmax.f32 %v307_v51, 0.0 }
  0x6f   :  { %v312_v61 = vadd.f32 %v804_v7, %v241_v52  ;;  %v313_v62 = vadd.f32 %v804_v7, %v242_v53  ;;  %v372_v2 = vmax.f32 %v308_v54, 0.0  ;;  %v373_v3 = vmax.f32 %v309_v55, 0.0 }
  0x70   :  { %v374_v4 = vmax.f32 %v310_v56, 0.0  ;;  %v375_v5 = vmax.f32 %v311_v57, 0.0  ;;  %434 = vst [vmem:[#allocation8 + $0x180] sm:$0xff] %v370_v59  ;;  %435 = vst [vmem:[#allocation8 + $0x188] sm:$0xff] %v371_v60  ;;  %v584_v10 = vunpack.c.l.bf16 %v625_v58  ;;  %v585_v11 = vunpack.c.h.bf16 %v625_v58 }
  0x71   :  { %v376_v8 = vmax.f32 %v312_v61, 0.0  ;;  %v377_v9 = vmax.f32 %v313_v62, 0.0  ;;  %436 = vst [vmem:[#allocation8 + $0x190] sm:$0xff] %v372_v2  ;;  %437 = vst [vmem:[#allocation8 + $0x198] sm:$0xff] %v373_v3  ;;  %v588_v12 = vunpack.c.l.bf16 %v626_v63  ;;  %v589_v13 = vunpack.c.h.bf16 %v626_v63 }
  0x72   :  { %438 = vst [vmem:[#allocation8 + $0x1a0] sm:$0xff] %v374_v4  ;;  %439 = vst [vmem:[#allocation8 + $0x1a8] sm:$0xff] %v375_v5  ;;  %v592_v14 = vunpack.c.l.bf16 %v627_v0  ;;  %v593_v15 = vunpack.c.h.bf16 %v627_v0  ;;  %v243_v16 = vmul.f32 %v584_v10, %v802_v1  ;;  %v244_v17 = vmul.f32 %v585_v11, %v802_v1 }
  0x73   :  { %440 = vst [vmem:[#allocation8 + $0x1b0] sm:$0xff] %v376_v8  ;;  %441 = vst [vmem:[#allocation8 + $0x1b8] sm:$0xff] %v377_v9  ;;  %v596_v18 = vunpack.c.l.bf16 %v628_v6  ;;  %v597_v19 = vunpack.c.h.bf16 %v628_v6  ;;  %v245_v20 = vmul.f32 %v588_v12, %v802_v1  ;;  %v246_v21 = vmul.f32 %v589_v13, %v802_v1 }
  0x74   :  { %v247_v22 = vmul.f32 %v592_v14, %v802_v1  ;;  %v248_v23 = vmul.f32 %v593_v15, %v802_v1  ;;  %v314_v24 = vadd.f32 %v804_v7, %v243_v16  ;;  %v315_v25 = vadd.f32 %v804_v7, %v244_v17 }
  0x75   :  { %v249_v26 = vmul.f32 %v596_v18, %v802_v1  ;;  %v250_v27 = vmul.f32 %v597_v19, %v802_v1  ;;  %v316_v28 = vadd.f32 %v804_v7, %v245_v20  ;;  %v317_v29 = vadd.f32 %v804_v7, %v246_v21 }
  0x76   :  { %v318_v30 = vadd.f32 %v804_v7, %v247_v22  ;;  %v319_v31 = vadd.f32 %v804_v7, %v248_v23  ;;  %v378_v32 = vmax.f32 %v314_v24, 0.0  ;;  %v379_v33 = vmax.f32 %v315_v25, 0.0 }
  0x77   :  { %v320_v34 = vadd.f32 %v804_v7, %v249_v26  ;;  %v321_v35 = vadd.f32 %v804_v7, %v250_v27  ;;  %v380_v36 = vmax.f32 %v316_v28, 0.0  ;;  %v381_v37 = vmax.f32 %v317_v29, 0.0 }
  0x78   :  { %v382_v38 = vmax.f32 %v318_v30, 0.0  ;;  %v383_v1 = vmax.f32 %v319_v31, 0.0  ;;  %442 = vst [vmem:[#allocation8 + $0x1c0] sm:$0xff] %v378_v32  ;;  %443 = vst [vmem:[#allocation8 + $0x1c8] sm:$0xff] %v379_v33 }
  0x79   :  { %v384_v39 = vmax.f32 %v320_v34, 0.0  ;;  %v385_v40 = vmax.f32 %v321_v35, 0.0  ;;  %444 = vst [vmem:[#allocation8 + $0x1d0] sm:$0xff] %v380_v36  ;;  %445 = vst [vmem:[#allocation8 + $0x1d8] sm:$0xff] %v381_v37 }
  0x7a   :  { %446 = vst [vmem:[#allocation8 + $0x1e0] sm:$0xff] %v382_v38  ;;  %447 = vst [vmem:[#allocation8 + $0x1e8] sm:$0xff] %v383_v1 }
  0x7b   :  { %448 = vst [vmem:[#allocation8 + $0x1f0] sm:$0xff] %v384_v39  ;;  %449 = vst [vmem:[#allocation8 + $0x1f8] sm:$0xff] %v385_v40 }
  0x7c   :  { %714 = shalt.err (!%p711_p0)
}
  0x7d   :  { %s715_s27 = scalar_lea.hbm %s949_s3, 8192 }
  0x7e   :  { %p716_p1 = scmp.ne.s32.totalorder %s949_s3, %s715_s27  ;;  %p719_p2 = scmp.lt.u32.totalorder %s715_s27, %s949_s3 }
  0x80   :  { %p721_p3 = pnand %p719_p2, %p716_p1 }
  0x82   :  { %724 = shalt.err (!%p721_p3)
}
  0x83   :  { %s737_s5 = smov 128   ;;  %s738_s6 = smov 8  }
  0x84   :  { %461 = dma.vmem_to_hbm [thread:$0]  %s456_s23, 8192, %s949_s3, [#allocation4], %s737_s5, %s737_s5, %s738_s6  }
  0x85   :  { %729 = dma.done.wait [#allocation4], 8192  }
  0x86   :  { %730 = vsyncadd [#allocation4], 4294959104 }
  0x87   :  { %465 = vsyncpa [#allocation3], 1 }
  0x88   :  { %466 = vsyncpa [#allocation6], 1 }
  0x89   :  { %467 = vsyncpa [#allocation4], 1 }

// kernel: conv_block.2
= control target key start
LH: loop header
LB: loop body
LE: loop exit
PB: predicated region body
PF: predicated region fallthrough
CT: control target
= control target key end

     0   :  { %s3488_s0 = inlined_call_operand.hbm [shape: bf16[2,4,6,18,4], index: 0, kind: input, shape index: {}]   ;;  %s3489_s1 = inlined_call_operand.hbm [shape: bf16[9,4,128], index: 1, kind: input, shape index: {}]   ;;  %s3490_s2 = inlined_call_operand.hbm [shape: bf16[2,16,16,128], index: 2, kind: output, shape index: {0}]   ;;  %s3491_s3 = inlined_call_operand.hbm [shape: f32[2,2,128], index: 3, kind: output, shape index: {1}]  }
   0x1   :  { %3506 = sst [smem:[#allocation20_spill]] %s3488_s0 }
   0x2   :  { %3507 = sst [smem:[#allocation21_spill]] %s3489_s1 }
   0x3   :  { %3508 = sst [smem:[#allocation22_spill]] %s3490_s2 }
   0x4   :  { %3509 = sst [smem:[#allocation23_spill]] %s3491_s3 }
   0x5   :  { %9 = vsyncpa [#allocation3], 0 }
   0x6   :  { %11 = vsyncpa [#allocation3 + $0x1], 0 }
   0x7   :  { %12 = vsyncpa [#allocation6], 0 }
   0x8   :  { %13 = vsyncpa [#allocation4], 0 }
   0x9   :  { %15 = vsyncpa [#allocation4 + $0x1], 0 }
   0xa   :  { %16 = vsyncpa [#allocation9], 0 }
   0xb   :  { %18 = vsyncpa [#allocation9 + $0x1], 0  ;;  %s2712_s12 = smov 0   ;;  %s2714_s13 = smov 0  }
   0xc   :  { %s2716_s14 = smov 0   ;;  %s2718_s15 = smov 0  }
   0xd   :  { %s2720_s16 = smov 0   ;;  %s2722_s17 = smov 0  }
   0xe   :  { %s2724_s18 = smov 0   ;;  %s2726_s19 = smov 0  }
   0xf   :  { %s2728_s20 = smov 0   ;;  %s2730_s21 = smov 0  }
  0x10   :  { %s2732_s22 = smov 0  }
  0x11 LB: > { %3510 = sst [smem:[#allocation14_spill]] %s2640_s12  ;;  %s1920_s23 = sadd.s32 4294967295, %s2680_s22   ;;  %s2680_s22 = sphi %s2732_s22, %s24_s22   ;;  %s2676_s21 = sphi %s2730_s21, %s3559_s21   ;;  %s2672_s20 = sphi %s2728_s20, %s3558_s20   ;;  %s2668_s19 = sphi %s2726_s19, %s3557_s19   ;;  %s2664_s18 = sphi %s2724_s18, %s3556_s18   ;;  %s2660_s17 = sphi %s2722_s17, %s3555_s17   ;;  %s2656_s16 = sphi %s2720_s16, %s3554_s16   ;;  %s2652_s15 = sphi %s2718_s15, %s3553_s15   ;;  %s2648_s14 = sphi %s2716_s14, %s3552_s14   ;;  %s2644_s13 = sphi %s2714_s13, %s3551_s13   ;;  %s2640_s12 = sphi %s2712_s12, %s3550_s12  }
  0x12   : > { %3511 = sst [smem:[#allocation15_spill]] %s2652_s15  ;;  %s1921_s24 = sadd.s32 4294967294, %s2680_s22  }
  0x13   : > { %p65_p0 = scmp.ne.s32.totalorder %s2656_s16, %s2652_s15  ;;  %p2771_p1 = scmp.eq.s32.totalorder %s1920_s23, 0 }
  0x14   : > { %p2775_p2 = scmp.eq.s32.totalorder %s1920_s23, 7  ;;  %p125_p3 = scmp.eq.s32.totalorder %s1921_s24, 7 }
  0x15   : > { %s3512_s25 = scalar_select %p2771_p1, 1, 0 }
  0x16   : > { %s3513_s26 = scalar_select %p2775_p2, 1, 0 }
  0x17   : > { %p2781_p4 = por %p2771_p1, %p65_p0  ;;  %p2786_p5 = por %p125_p3, %p65_p0 }
  0x18   : > { %p146_p6 = scmp.ne.s32.totalorder %s2648_s14, %s2644_s13  ;;  %p152_p7 = scmp.ne.s32.totalorder %s2644_s13, %s2640_s12 }
  0x19   : > { %s3514_s27 = scalar_select %p2781_p4, 1, 0 }
  0x1a   : > { %s3515_s29 = scalar_select %p2786_p5, 1, 0 }
  0x1b   : > { %p1922_p8 = scmp.ge.s32.totalorder %s2680_s22, 1  ;;  %p2797_p9 = por %p146_p6, %p2775_p2 }
  0x1c   : > { %3516 = sst [smem:[#allocation16_spill]] %s3515_s29  ;;  %p160_p10 = scmp.lt.s32.totalorder %s2680_s22, 9 }
  0x1d   : > { %s3517_s30 = scalar_select %p2797_p9, 1, 0 }
  0x1e   : > { %p2802_p11 = por %p152_p7, %p125_p3  ;;  %p2806_p12 = pnand %p1922_p8, %p160_p10 }
  0x1f   : > { %3518 = sst [smem:[#allocation17_spill]] %s3517_s30  ;;  %s2682_s6 = smov [#allocation5]  }
  0x20   : > { %s3519_s4 = scalar_select %p2802_p11, 1, 0 }
  0x21   : > { %s3521_s5 = scalar_select %p2806_p12, 1, 0 }
  0x22   : > { %3520 = sst [smem:[#allocation18_spill]] %s3519_s4  ;;  %s174_s7 = sshll.u32 %s2682_s6, 4  ;;  %s175_s7 = int_to_ptr.vmem [resolvable:$true] %s174_s7 }
  0x23   : > { %p2338_p13 = pneg %p2806_p12  ;;  %s3523_s1 = sld [smem:[#allocation21_spill]] }
  0x25   : > { %p2814_p0 = pnand %p2338_p13, %p2771_p1 }
  0x27   : > { %p2466_p6 = pneg %p2814_p0 }
  0x29   : > { %s2464_s11 = scalar_lea.hbm %s3523_s1, 288 }
  0x2a   : > { %p2465_p3 = scmp.ne.s32.totalorder %s3523_s1, %s2464_s11  ;;  %p2471_p10 = scmp.lt.u32.totalorder %s2464_s11, %s3523_s1 }
  0x2c   : > { %p2467_p7 = pnand %p2466_p6, %p2465_p3 }
  0x2e   : > { %p2468_p8 = pneg %p2467_p7 }
  0x30   : > { %p2473_p13 = pnand %p2471_p10, %p2468_p8 }
  0x32   : > { %2476 = shalt.err (!%p2473_p13)
}
  0x33   : > { %s2477_s4 = scalar_lea.vmem %s175_s7, 288  ;;  %p2485_p1 = scmp.lt.s32.totalorder %s175_s7, %s175_s7 }
  0x34   : > { %p2478_p11 = scmp.ne.s32.totalorder %s175_s7, %s2477_s4  ;;  %p2486_p4 = scmp.lt.s32.totalorder %s2477_s4, %s2477_s4 }
  0x36   : > { %p2480_p5 = pnand %p2478_p11, %p2466_p6  ;;  %p2487_p12 = por %p2486_p4, %p2485_p1 }
  0x38   : > { %p2481_p9 = pneg %p2480_p5 }
  0x3a   : > { %p2488_p2 = pnand %p2487_p12, %p2481_p9 }
  0x3c   : > { %2491 = shalt.err (!%p2488_p2)
}
  0x3d   : > { %s2683_s9 = smov 32   ;;  %s2684_s28 = smov 2  }
  0x3e   : > { %2341 = dma.hbm_to_vmem [thread:$0]  (!%p2814_p0), %s3523_s1, 288, %s175_s7, [#allocation6], %s2683_s9, %s2683_s9, %s2684_s28  }
  0x3f   : > { %s36_s11 = sadd.s32 1, %s2672_s20  ;;  %s43_s23 = sadd.s32 1, %s2676_s21 }
  0x40   : > { %p37_p1 = scmp.ge.s32.totalorder %s36_s11, 4  ;;  %s52_s24 = sadd.s32 1, %s2660_s17 }
  0x41   : > { %p59_p2 = scmp.ne.s32.totalorder %s2660_s17, %s2656_s16  ;;  %p60_p4 = scmp.eq.s32.totalorder %s2680_s22, 0 }
  0x42   : > { %s3561_s11 = smov (%p37_p1, %s36_s11), 0  ;;  %s3563_s23 = smov (!%p37_p1, %s43_s23), %s2676_s21 }
  0x43   : > { %3524 = sst [smem:[#allocation19_spill]] %s3561_s11  ;;  %s48_s8 = ssub.s32 %s2672_s20, %s3561_s11 }
  0x44   : > { %p2845_p5 = por %p60_p4, %p59_p2  ;;  %p45_p9 = scmp.ge.s32.totalorder %s3563_s23, 2 }
  0x45   : > { %p3526_p11 = scmp.ne.s32.totalorder %s3513_s26, 0  ;;  %p2354_p0 = scmp.lt.s32.totalorder %s2680_s22, 8 }
  0x46   : > { %s188_s9 = sand.u32 1, %s2660_s17   ;;  %s3565_s23 = smov (%p45_p9, %s3563_s23), 0 }
  0x47   : > { %p2851_p12 = por %p3526_p11, %p59_p2  ;;  %s2324_s28 = smul.u32 72, %s188_s9 }
  0x48   : > { %s47_s10 = ssub.s32 %s2676_s21, %s3565_s23  ;;  %s2325_s4 = smul.u32 18, %s2672_s20 }
  0x49   : > { %s49_s1 = sor.u32 %s48_s8, %s47_s10  ;;  %p134_p3 = scmp.eq.s32.totalorder %s47_s10, 0 }
  0x4a   : > { %p50_p6 = scmp.eq.s32.totalorder %s49_s1, 0  ;;  %s3528_s11 = sadd.s32 1, %s2648_s14 }
  0x4b   : > { %s2865_s12 = scalar_select %p134_p3, %s2648_s14, %s3528_s11  }
  0x4c   : > { %s2868_s26 = scalar_select %p50_p6, %s2660_s17, %s52_s24  }
  0x4d   : > { %s2326_s29 = smul.u32 72, %s2676_s21  ;;  %s192_s15 = scalar_lea.vmem [#allocation2], %s2324_s28 }
  0x4e   : > { %s201_s3 = sshll.u32 %s192_s15, 4  ;;  %p2877_p7 = pnand %p2354_p0, %p2845_p5  ;;  %s2871_s3 = int_to_ptr.vmem [resolvable:$true] %s201_s3 }
  0x4f   : > { %s198_s8 = sadd.s32 %s2326_s29, %s2325_s4  ;;  %s3530_s0 = sld [smem:[#allocation20_spill]] }
  0x50   : > { %s1925_s1 = sshll.u32 %s198_s8, 6  ;;  %s2886_s15 = scalar_lea.sflag [#allocation3], %s188_s9 }
  0x51   : > { %p2494_p10 = pneg %p2877_p7 }
  0x55   : > { %s2884_s24 = scalar_lea.hbm %s3530_s0, %s1925_s1  ;;  %s2497_s4 = scalar_lea.hbm %s3530_s0, 9216 }
  0x56   : > { %s2492_s6 = scalar_lea.hbm %s2884_s24, 1152  ;;  %p2498_p2 = scmp.lt.u32.totalorder %s2884_s24, %s3530_s0 }
  0x57   : > { %p2493_p8 = scmp.ne.s32.totalorder %s2884_s24, %s2492_s6  ;;  %p2499_p4 = scmp.lt.u32.totalorder %s2497_s4, %s2492_s6 }
  0x58   : > { %p2501_p9 = scmp.lt.u32.totalorder %s2492_s6, %s2884_s24 }
  0x59   : > { %p2495_p13 = pnand %p2494_p10, %p2493_p8  ;;  %p2500_p5 = por %p2499_p4, %p2498_p2 }
  0x5b   : > { %p2496_p1 = pneg %p2495_p13  ;;  %p2502_p11 = por %p2501_p9, %p2500_p5 }
  0x5d   : > { %p2503_p0 = pnand %p2502_p11, %p2496_p1 }
  0x5f   : > { %2506 = shalt.err (!%p2503_p0)
}
  0x60   : > { %s2507_s9 = scalar_lea.vmem %s2871_s3, 1152  ;;  %s2685_s10 = smov [#allocation2]  }
  0x61   : > { %p2508_p3 = scmp.ne.s32.totalorder %s2871_s3, %s2507_s9  ;;  %s2512_s11 = sshll.u32 %s2685_s10, 4  ;;  %s2513_s11 = int_to_ptr.vmem [resolvable:$false] %s2512_s11 }
  0x62   : > { %s2514_s29 = scalar_lea.vmem %s2513_s11, 2304  ;;  %p2515_p13 = scmp.lt.s32.totalorder %s2871_s3, %s2513_s11 }
  0x63   : > { %p2510_p6 = pnand %p2508_p3, %p2494_p10  ;;  %p2516_p2 = scmp.lt.s32.totalorder %s2514_s29, %s2507_s9 }
  0x65   : > { %p2511_p8 = pneg %p2510_p6  ;;  %p2517_p4 = por %p2516_p2, %p2515_p13 }
  0x67   : > { %p2518_p5 = pnand %p2517_p4, %p2511_p8 }
  0x69   : > { %2521 = shalt.err (!%p2518_p5)
}
  0x6a   : > { %s2686_s6 = smov 64   ;;  %s2687_s28 = smov 4  }
  0x6b   : > { %2345 = dma.hbm_to_vmem [thread:$0]  (!%p2877_p7), %s2884_s24, 1152, %s2871_s3, %s2886_s15, %s2686_s6, %s2686_s6, %s2687_s28  }
  0x6c   : > { %p3531_p10 = scmp.ne.s32.totalorder %s3521_s5, 0 }
  0x6d   : > { %s2917_s4 = sand.u32 (!%p3531_p10), 1, %s2656_s16   ;;  %p3532_p1 = scmp.ne.s32.totalorder (!%p3531_p10), %s3514_s27, 0 }
  0x6e   : > { %213 = sbr.rel (%p3531_p10) target bundleno = 520 (0x208), region = 28  ;;  %s216_s1 = scalar_lea.sflag (!%p3531_p10), [#allocation3], %s2917_s4 }
  0x6f   : > { %s2327_s8 = smul.u32 (!%p3531_p10), 72, %s2917_s4 }
  0x71   : > { %s2921_s9 = scalar_lea.vmem (!%p3531_p10), [#allocation2], %s2327_s8 }
  0x75   : > { %2623 = dma.done.wait (%p3532_p1), %s216_s1, 1152  }
  0x76   : > { %2625 = vsyncadd (%p3532_p1), %s216_s1, 4294966144  ;;  %p3533_p7 = scmp.ne.s32.totalorder %s3512_s25, 0 }
  0x78   : > { %2627 = dma.done.wait (%p3533_p7), [#allocation6], 288  }
  0x79   : > { %2629 = vsyncadd (%p3533_p7), [#allocation6], 4294967008  ;;  %s1928_s3 = sshll.u32 %s2917_s4, 5  ;;  %s248_s30 = sand.u32 1, %s2644_s13   ;;  %vm392_vm0 = vcmask 1041408   ;;  %vm379_vm4 = vcmask 31744  }
  0x7a   : > { %s2935_s5 = sshll.u32 %s248_s30, 1  ;;  %vm266_vm1 = vsmask.f32 3328  ;;  %vm267_vm2 = vsmask.f32 7440  ;;  %vm573_vm5 = vcmask 1042432  }
  0x7b   : > { %v366_v0 = vld [vmem:[#allocation5 + $0x2] sm:$0x3]  ;;  %v2937_v1 = vld [vmem:[#allocation5 + $0x8] sm:$0x3]  ;;  %v2940_v2 = vld [vmem:[%s2921_s9] sm:$0xf] }
  0x7c   : > { %2314 = vmatprep.subr.msk.bf16.mxu1 %vm392_vm0, %v366_v0  ;;  %2318 = vmatprep.subr.msk.bf16.mxu0 %vm392_vm0, %v2937_v1  ;;  %v394_v3 = vsel %vm392_vm0, %v366_v0, 0  ;;  %v2948_v4 = vsel %vm392_vm0, %v2937_v1, 0  ;;  %v2951_v5 = vld [vmem:[%s2921_s9 + $0x4] sm:$0xf]  ;;  %v2954_v6 = vld [vmem:[%s2921_s9 + $0x8] sm:$0x1]  ;;  %vm2982_vm3 = vmor %vm266_vm1, %vm267_vm2 }
  0x7d   : > { %2159 = vmatpush3.bf16.msra.mxu1 %v394_v3  ;;  %2199 = vmatpush3.bf16.msra.mxu0 %v2948_v4  ;;  %v270_v7 = vshrl.u32 %v2940_v2, 16  ;;  %v273_v8 = vshll.u32 %v2940_v2, 16  ;;  %v279_v9 = vshll.u32 %v2951_v5, 16  ;;  %v283_v10 = vshrl.u32 %v2951_v5, 16  ;;  %v261_v11 = vld [vmem:[#allocation5] sm:$0x3] }
  0x7e   : > { %v289_v12 = vshll.u32 %v2954_v6, 16  ;;  %2315 = vmatprep.subr.msk.bf16.mxu1 %vm392_vm0, %v261_v11  ;;  %v1974_v13 = vld [vmem:[%s2921_s9 + $0xc] sm:$0xf]  ;;  %v2965_v14 = vld [vmem:[%s2921_s9 + $0x10] sm:$0xf]  ;;  %v494_v3 = vsel %vm392_vm0, %v261_v11, 0 }
  0x7f   : > { %v272_v15 = vrot.slane %v270_v7, 4  ;;  %v275_v16 = vrot.slane %v273_v8, 5  ;;  %v281_v17 = vrot.slane %v279_v9, 5  ;;  %v285_v18 = vrot.slane %v283_v10, 4  ;;  %v2968_v19 = vld [vmem:[%s2921_s9 + $0x14] sm:$0x1] }
  0x80   : > { %v291_v20 = vrot.slane %v289_v12, 5  ;;  %v838_v21 = vshrl.u32 %v1974_v13, 16  ;;  %v841_v22 = vshll.u32 %v1974_v13, 16  ;;  %v847_v23 = vshll.u32 %v2965_v14, 16  ;;  %v2971_v24 = vld [vmem:[#allocation5 + $0xa] sm:$0x3] }
  0x81   : > { %v276_v25 = vor.u32 %v275_v16, %v272_v15  ;;  %v286_v26 = vor.u32 %v285_v18, %v281_v17  ;;  %v851_v27 = vshrl.u32 %v2965_v14, 16  ;;  %v857_v28 = vshll.u32 %v2968_v19, 16  ;;  %2320 = vmatprep.subr.msk.bf16.mxu0 %vm392_vm0, %v2971_v24  ;;  %v2978_v29 = vld [vmem:[%s2921_s9 + $0xc] sm:$0xf]  ;;  %v2987_v34 = vld [vmem:[%s2921_s9 + $0x10] sm:$0xf] }
  0x82   : > { %v840_v31 = vrot.slane %v838_v21, 4  ;;  %v843_v32 = vrot.slane %v841_v22, 5  ;;  %v849_v33 = vrot.slane %v847_v23, 5  ;;  %v2990_v40 = vld [vmem:[%s2921_s9 + $0x14] sm:$0x1]  ;;  %v294_v41 = vshrl.u32 %v2978_v29, 16 }
  0x83   : > { %v277_v35 = vrot.slane %v276_v25, 4  ;;  %v287_v36 = vrot.slane %v286_v26, 4  ;;  %v853_v37 = vrot.slane %v851_v27, 4  ;;  %v859_v39 = vrot.slane %v857_v28, 5  ;;  %v1977_v55 = vld [vmem:[%s2921_s9 + $0x18] sm:$0xf] }
  0x84   : > { %v844_v38 = vor.u32 %v843_v32, %v840_v31  ;;  %v297_v42 = vshll.u32 %v2978_v29, 16  ;;  %v303_v46 = vshll.u32 %v2987_v34, 16  ;;  %v296_v49 = vrot.slane %v294_v41, 4  ;;  %v3008_v60 = vld [vmem:[%s2921_s9 + $0x1c] sm:$0xf]  ;;  %s243_s25 = scalar_lea.vmem [#allocation7], %s1928_s3 }
  0x85   : > { %v282_v43 = vsel %vm2982_vm3, %v277_v35, %v281_v17  ;;  %v292_v44 = vsel %vm2982_vm3, %v287_v36, %v291_v20  ;;  %v854_v45 = vor.u32 %v853_v37, %v849_v33  ;;  %v307_v53 = vshrl.u32 %v2987_v34, 16  ;;  %v3011_v61 = vld [vmem:[%s2921_s9 + $0x20] sm:$0x1]  ;;  %v3020_v17 = vld [vmem:[%s2921_s9 + $0x18] sm:$0xf]  ;;  %s3375_s27 = scalar_lea.vmem [#allocation8], %s2935_s5 }
  0x86   : > { %v1930_v47 = vcombine.low %v282_v43, %v292_v44  ;;  %v845_v48 = vrot.slane %v844_v38, 4  ;;  %v299_v50 = vrot.slane %v297_v42, 5  ;;  %v305_v52 = vrot.slane %v303_v46, 5  ;;  %v3027_v22 = vld [vmem:[%s2921_s9 + $0x1c] sm:$0xf]  ;;  %p2062_p9 = scmp.ne.s32.totalorder %s2664_s18, 0 }
  0x87   : > { %v855_v51 = vrot.slane %v854_v45, 4  ;;  %v313_v54 = vshll.u32 %v2990_v40, 16  ;;  %v1053_v57 = vrot.slane %v2965_v14, 5  ;;  %v1056_v58 = vrot.slane %v2968_v19, 5  ;;  %v3032_v32 = vld [vmem:[%s2921_s9 + $0x20] sm:$0x1] }
  0x88   : > { %2160 = vmatprep.mubr.msk.bf16.mxu1 %vm379_vm4, %v1930_v47  ;;  %v850_v56 = vsel %vm2982_vm3, %v845_v48, %v849_v33  ;;  %v300_v59 = vor.u32 %v299_v50, %v296_v49  ;;  %v309_v63 = vrot.slane %v307_v53, 4  ;;  %v862_v9 = vshrl.u32 %v1977_v55, 16  ;;  %v3041_v41 = vld [vmem:[%s2921_s9 + $0x24] sm:$0xf]  ;;  %v3044_v42 = vld [vmem:[%s2921_s9 + $0x28] sm:$0xf] }
  0x89   : > { %v860_v62 = vsel %vm2982_vm3, %v855_v51, %v859_v39  ;;  %v315_v0 = vrot.slane %v313_v54, 5  ;;  %v865_v10 = vshll.u32 %v1977_v55, 16  ;;  %vm574_vm6 = vcmask 1046532   ;;  %v3047_v46 = vld [vmem:[%s2921_s9 + $0x2c] sm:$0x1] }
  0x8a   : > { %v1986_v7 = vcombine.low %v850_v56, %v860_v62  ;;  %v301_v8 = vrot.slane %v300_v59, 4  ;;  %v310_v12 = vor.u32 %v309_v63, %v305_v52  ;;  %v871_v13 = vshll.u32 %v3008_v60, 16  ;;  %v3050_v51 = vld [vmem:[#allocation5 + $0x4] sm:$0x3]  ;;  %vm3068_vm7 = vmor %vm573_vm5, %vm574_vm6 }
  0x8b   : > { %v875_v15 = vshrl.u32 %v3008_v60, 16  ;;  %v881_v16 = vshll.u32 %v3011_v61, 16  ;;  %v864_v18 = vrot.slane %v862_v9, 4  ;;  %v867_v20 = vrot.slane %v865_v10, 5  ;;  %v1994_v56 = vld [vmem:[%s2921_s9 + $0xc] sm:$0xe] }
  0x8c   : > { %2200 = vmatprep.mubr.msk.bf16.mxu0 %vm379_vm4, %v1986_v7  ;;  %v306_v11 = vsel %vm2982_vm3, %v301_v8, %v305_v52  ;;  %v1063_v21 = vrot.slane %v3011_v61, 5  ;;  %v311_v23 = vrot.slane %v310_v12, 4  ;;  %v873_v25 = vrot.slane %v871_v13, 5  ;;  %v1191_v7 = vld [vmem:[#allocation5 + $0xc] sm:$0x3] }
  0x8d   : > { %v877_v26 = vrot.slane %v875_v15, 4  ;;  %v883_v27 = vrot.slane %v881_v16, 5  ;;  %v868_v28 = vor.u32 %v867_v20, %v864_v18  ;;  %v1106_v31 = vsel %vm392_vm0, %v2971_v24, 0  ;;  %v1995_v8 = vld [vmem:[%s2921_s9 + $0x18] sm:$0xe] }
  0x8e   : > { %v318_v33 = vshrl.u32 %v3020_v17, 16  ;;  %v321_v35 = vshll.u32 %v3020_v17, 16  ;;  %v316_v36 = vsel %vm2982_vm3, %v311_v23, %v315_v0  ;;  %v327_v38 = vshll.u32 %v3027_v22, 16  ;;  %v1409_v61 = vld [vmem:[#allocation5 + $0xe] sm:$0x3] }
  0x8f   : > { %v878_v37 = vor.u32 %v877_v26, %v873_v25  ;;  %v331_v39 = vshrl.u32 %v3027_v22, 16  ;;  %v1931_v24 = vcombine.low %v306_v11, %v316_v36  ;;  %v869_v43 = vrot.slane %v868_v28, 4  ;;  %v3083_v36 = vld [vmem:[%s2921_s9 + $0x2c] sm:$0x1] }
  0x90   : > { %v320_v44 = vrot.slane %v318_v33, 4  ;;  %v323_v45 = vrot.slane %v321_v35, 5  ;;  %v329_v48 = vrot.slane %v327_v38, 5  ;;  %v337_v50 = vshll.u32 %v3032_v32, 16 }
  0x91   : > { %v879_v47 = vrot.slane %v878_v37, 4  ;;  %v333_v49 = vrot.slane %v331_v39, 4  ;;  %2161 = vmatmul.mubr.msk.bf16.vlgmr.msra.gmra.mrb[0].mxu1 %vm379_vm4, %v1931_v24  ;;  %v874_v52 = vsel %vm2982_vm3, %v869_v43, %v873_v25  ;;  %v342_v54 = vshrl.u32 %v3041_v41, 16  ;;  %v1996_v37 = vld [vmem:[%s2921_s9 + $0x24] sm:$0xe] }
  0x92   : > { %v324_v53 = vor.u32 %v323_v45, %v320_v44  ;;  %v345_v55 = vshll.u32 %v3041_v41, 16  ;;  %2169 = vmatpush3.bf16.msra.mxu1 %v494_v3  ;;  %v339_v63 = vrot.slane %v337_v50, 5  ;;  %v351_v0 = vshll.u32 %v3044_v42, 16 }
  0x93   : > { %v884_v59 = vsel %vm2982_vm3, %v879_v47, %v883_v27  ;;  %v334_v62 = vor.u32 %v333_v49, %v329_v48  ;;  %v344_v12 = vrot.slane %v342_v54, 4  ;;  %2316 = vmatprep.subr.msk.bf16.mxu1 %vm392_vm0, %v3050_v51  ;;  %v355_v16 = vshrl.u32 %v3044_v42, 16  ;;  %v3078_v27 = vld [vmem:[%s2921_s9 + $0x28] sm:$0xf] }
  0x94   : > { %v1987_v9 = vcombine.low %v874_v52, %v884_v59  ;;  %v325_v10 = vrot.slane %v324_v53, 4  ;;  %v347_v13 = vrot.slane %v345_v55, 5  ;;  %v353_v3 = vrot.slane %v351_v0, 5  ;;  %v3107_v52 = vld [vmem:[%s2921_s9 + $0x34] sm:$0xf] }
  0x95   : > { %v335_v15 = vrot.slane %v334_v62, 4  ;;  %v361_v11 = vshll.u32 %v3047_v46, 16  ;;  %v1998_v25 = vrot.slane %v1994_v56, 9  ;;  %v1055_v26 = vrot.slane %v1053_v57, 4  ;;  %v1997_v53 = vld [vmem:[%s2921_s9 + $0x30] sm:$0xe] }
  0x96   : > { %2201 = vmatmul.mubr.msk.bf16.vlgmr.msra.gmra.mrb[0].mxu0 %vm379_vm4, %v1987_v9  ;;  %v330_v20 = vsel %vm2982_vm3, %v325_v10, %v329_v48  ;;  %v348_v23 = vor.u32 %v347_v13, %v344_v12  ;;  %v357_v33 = vrot.slane %v355_v16, 4  ;;  %v1999_v35 = vrot.slane %v1995_v8, 9  ;;  %v561_v12 = vld [vmem:[%s2921_s9] sm:$0xe]  ;;  %v562_v13 = vld [vmem:[%s2921_s9 + $0xc] sm:$0xe] }
  0x97   : > { %2209 = vmatpush3.bf16.msra.mxu0 %v1106_v31  ;;  %v340_v28 = vsel %vm2982_vm3, %v335_v15, %v339_v63  ;;  %v1054_v24 = vsel %vm3068_vm7, %v1998_v25, %v1053_v57  ;;  %v1057_v31 = vsel %vm3068_vm7, %v1055_v26, %v1056_v58  ;;  %v363_v44 = vrot.slane %v361_v11, 5  ;;  %v716_v25 = vld [vmem:[#allocation5 + $0x6] sm:$0x3] }
  0x98   : > { %v1932_v38 = vcombine.low %v330_v20, %v340_v28  ;;  %v349_v39 = vrot.slane %v348_v23, 4  ;;  %2321 = vmatprep.subr.msk.bf16.mxu0 %vm392_vm0, %v1191_v7  ;;  %v358_v43 = vor.u32 %v357_v33, %v353_v3  ;;  %v2002_v45 = vcombine.low %v1054_v24, %v1057_v31  ;;  %v3140_v28 = vld [vmem:[%s2921_s9 + $0x18] sm:$0xe] }
  0x99   : > { %v1060_v47 = vrot.slane %v3008_v60, 5  ;;  %v2000_v57 = vrot.slane %v1996_v37, 9  ;;  %v1067_v49 = vrot.slane %v3078_v27, 5  ;;  %v1938_v50 = vcombine.low %v2940_v2, %v2951_v5  ;;  %v3119_v2 = vld [vmem:[%s2921_s9 + $0x38] sm:$0x1] }
  0x9a   : > { %2164 = vmatprep.mubr.msk.bf16.mxu1 %vm379_vm4, %v1932_v38  ;;  %v354_v14 = vsel %vm2982_vm3, %v349_v39, %v353_v3  ;;  %v359_v19 = vrot.slane %v358_v43, 4  ;;  %2210 = vmatprep.mubr.msk.bf16.mxu0 %vm379_vm4, %v2002_v45  ;;  %v1070_v60 = vrot.slane %v3083_v36, 5  ;;  %v585_v62 = vrot.slane %v2987_v34, 5  ;;  %v3147_v37 = vld [vmem:[%s2921_s9 + $0x24] sm:$0xe] }
  0x9b   : > { %v1061_v58 = vsel %vm3068_vm7, %v1999_v35, %v1060_v47  ;;  %v1062_v48 = vrot.slane %v1060_v47, 4  ;;  %v1068_v56 = vsel %vm3068_vm7, %v2000_v57, %v1067_v49  ;;  %v1069_v59 = vrot.slane %v1067_v49, 4  ;;  %v2026_v38 = vld [vmem:[%s2921_s9 + $0x18] sm:$0xf] }
  0x9c   : > { %v364_v54 = vsel %vm2982_vm3, %v359_v19, %v363_v44  ;;  %v2001_v9 = vrot.slane %v1997_v53, 9  ;;  %v1074_v10 = vrot.slane %v3107_v52, 5  ;;  %v1077_v3 = vrot.slane %v3119_v2, 5  ;;  %v2456_v44 = vld [vmem:[%s2921_s9 + $0x18] sm:$0xff]  }
  0x9d   : > { %v1064_v55 = vsel %vm3068_vm7, %v1062_v48, %v1063_v21  ;;  %v1933_v63 = vcombine.low %v354_v14, %v364_v54  ;;  %v1071_v8 = vsel %vm3068_vm7, %v1069_v59, %v1070_v60  ;;  %v1225_v21 = vsel %vm392_vm0, %v1191_v7, 0  ;;  %v2029_v14 = vld [vmem:[%s2921_s9 + $0x24] sm:$0xf] }
  0x9e   : > { %v2003_v0 = vcombine.low %v1061_v58, %v1064_v55  ;;  %v2004_v15 = vcombine.low %v1068_v56, %v1071_v8  ;;  %v1076_v16 = vrot.slane %v1074_v10, 4  ;;  %v588_v11 = vrot.slane %v2990_v40, 5  ;;  %v3190_v55 = vld [vmem:[%s2921_s9 + $0x28] sm:$0xf] }
  0x9f   : > { %2165 = vmatmul.mubr.msk.bf16.gmra.mrb[4].mxu1 %vm379_vm4, %v1933_v63  ;;  %v578_v20 = vrot.slane %v2951_v5, 5  ;;  %v1075_v7 = vsel %vm3068_vm7, %v2001_v9, %v1074_v10  ;;  %v1947_v26 = vrot.slane %v562_v13, 9  ;;  %v587_v40 = vrot.slane %v585_v62, 4 }
  0xa0   : > { %2170 = vmatprep.mubr.msk.bf16.mxu1 %vm379_vm4, %v1938_v50  ;;  %v1078_v23 = vsel %vm3068_vm7, %v1076_v16, %v1077_v3  ;;  %v581_v33 = vrot.slane %v2954_v6, 5  ;;  %v1939_v5 = vcombine.low %v2978_v29, %v2987_v34  ;;  %v1946_v35 = vrot.slane %v561_v12, 9  ;;  %v3160_v29 = vld [vmem:[%s2921_s9 + $0x1c] sm:$0xf]  ;;  %v3163_v34 = vld [vmem:[%s2921_s9 + $0x20] sm:$0x1] }
  0xa1   : > { %v631_v39 = vsel %vm392_vm0, %v3050_v51, 0  ;;  %v1940_v24 = vcombine.low %v3020_v17, %v3027_v22  ;;  %v1941_v31 = vcombine.low %v3041_v41, %v3044_v42  ;;  %v3157_v6 = vsel %vm392_vm0, %v1409_v61, 0 }
  0xa2   : > { %2211 = vmatmul.mubr.msk.bf16.vlgmr.msra.gmra.mrb[0].mxu0 %vm379_vm4, %v2003_v0  ;;  %v2005_v43 = vcombine.low %v1075_v7, %v1078_v23  ;;  %v580_v45 = vrot.slane %v578_v20, 4  ;;  %v3167_v47 = vsel %vm392_vm0, %v716_v25, 0  ;;  %v1948_v51 = vrot.slane %v3140_v28, 9  ;;  %v3207_v7 = vld [vmem:[%s2921_s9 + $0x34] sm:$0xf]  ;;  %v2457_v23 = vld [vmem:[%s2921_s9 + $0x24] sm:$0xff]  }
  0xa3   : > { %2219 = vmatpush3.bf16.msra.mxu0 %v1225_v21  ;;  %2214 = vmatprep.mubr.msk.bf16.mxu0 %vm379_vm4, %v2004_v15  ;;  %v3173_v17 = vsel %vm3068_vm7, %v1947_v26, %v585_v62  ;;  %v3177_v41 = vsel %vm3068_vm7, %v587_v40, %v588_v11  ;;  %v592_v57 = vrot.slane %v3027_v22, 5  ;;  %v1313_v19 = vshrl.u32 %v2026_v38, 16  ;;  %v2032_v21 = vld [vmem:[%s2921_s9 + $0x30] sm:$0xf]  ;;  %v3204_v11 = vld [vmem:[%s2921_s9 + $0x2c] sm:$0x1] }
  0xa4   : > { %2322 = vmatprep.subr.msk.bf16.mxu0 %vm392_vm0, %v1409_v61  ;;  %v579_v58 = vsel %vm3068_vm7, %v1946_v35, %v578_v20  ;;  %v595_v48 = vrot.slane %v3032_v32, 5  ;;  %v1316_v49 = vshll.u32 %v2026_v38, 16  ;;  %v1322_v50 = vshll.u32 %v3160_v29, 16  ;;  %v3214_v38 = vld [vmem:[#allocation5 + $0x10] sm:$0x3] }
  0xa5   : > { %v1949_v60 = vrot.slane %v3147_v37, 9  ;;  %v1315_v53 = vrot.slane %v1313_v19, 4  ;;  %v1326_v54 = vshrl.u32 %v3160_v29, 16  ;;  %v1332_v22 = vshll.u32 %v3163_v34, 16  ;;  %v2035_v19 = vld [vmem:[%s2921_s9 + $0x3c] sm:$0xf] }
  0xa6   : > { %v582_v32 = vsel %vm3068_vm7, %v580_v45, %v581_v33  ;;  %v1951_v56 = vcombine.low %v3173_v17, %v3177_v41  ;;  %v1318_v59 = vrot.slane %v1316_v49, 5  ;;  %v1324_v62 = vrot.slane %v1322_v50, 5 }
  0xa7   : > { %2171 = vmatmul.mubr.msk.bf16.vlgmr.msra.gmra.mrb[0].mxu1 %vm379_vm4, %v1939_v5  ;;  %v594_v63 = vrot.slane %v592_v57, 4  ;;  %v599_v0 = vrot.slane %v3044_v42, 5  ;;  %v1328_v8 = vrot.slane %v1326_v54, 4  ;;  %v1337_v9 = vshrl.u32 %v2029_v14, 16 }
  0xa8   : > { %2179 = vmatpush3.bf16.msra.mxu1 %v631_v39  ;;  %2174 = vmatprep.mubr.msk.bf16.mxu1 %vm379_vm4, %v1940_v24  ;;  %v1319_v10 = vor.u32 %v1318_v59, %v1315_v53  ;;  %v1340_v61 = vshll.u32 %v2029_v14, 16  ;;  %v1346_v12 = vshll.u32 %v3190_v55, 16  ;;  %v1350_v13 = vshrl.u32 %v3190_v55, 16  ;;  %v3223_v14 = vld [vmem:[%s2921_s9 + $0x38] sm:$0x1] }
  0xa9   : > { %2317 = vmatprep.subr.msk.bf16.mxu1 %vm392_vm0, %v716_v25  ;;  %v1950_v15 = vcombine.low %v579_v58, %v582_v32  ;;  %v1329_v3 = vor.u32 %v1328_v8, %v1324_v62  ;;  %v1334_v16 = vrot.slane %v1332_v22, 5  ;;  %v1339_v20 = vrot.slane %v1337_v9, 4  ;;  %v2458_v25 = vld [vmem:[%s2921_s9 + $0x30] sm:$0xff]   ;;  %v3230_v53 = vld [vmem:[%s2921_s9 + $0x40] sm:$0xf] }
  0xaa   : > { %2215 = vmatmul.mubr.msk.bf16.gmra.mrb[4].mxu0 %vm379_vm4, %v2005_v43  ;;  %v1320_v26 = vrot.slane %v1319_v10, 4  ;;  %v1342_v40 = vrot.slane %v1340_v61, 5  ;;  %v3211_v28 = vrot.slane %v1346_v12, 5  ;;  %v1352_v33 = vrot.slane %v1350_v13, 4 }
  0xab   : > { %2220 = vmatprep.mubr.msk.bf16.mxu0 %vm379_vm4, %v2456_v44  ;;  %v602_v5 = vrot.slane %v3047_v46, 5  ;;  %v1330_v35 = vrot.slane %v1329_v3, 4  ;;  %v1361_v39 = vshrl.u32 %v2032_v21, 16  ;;  %v1364_v24 = vshll.u32 %v2032_v21, 16  ;;  %v2459_v21 = vld [vmem:[%s2921_s9 + $0x3c] sm:$0xff]  }
  0xac   : > { %v593_v43 = vsel %vm3068_vm7, %v1948_v51, %v592_v57  ;;  %v596_v44 = vsel %vm3068_vm7, %v594_v63, %v595_v48  ;;  %v1356_v45 = vshll.u32 %v3204_v11, 16  ;;  %v1370_v46 = vshll.u32 %v3207_v7, 16 }
  0xad   : > { %v1343_v58 = vor.u32 %v1342_v40, %v1339_v20  ;;  %v1363_v49 = vrot.slane %v1361_v39, 4  ;;  %v1366_v50 = vrot.slane %v1364_v24, 5  ;;  %v1325_v51 = vsel %vm2982_vm3, %v1320_v26, %v1324_v62  ;;  %v3249_v40 = vld [vmem:[%s2921_s9 + $0x44] sm:$0x1] }
  0xae   : > { %v1335_v57 = vsel %vm2982_vm3, %v1330_v35, %v1334_v16  ;;  %v1353_v48 = vor.u32 %v1352_v33, %v3211_v28  ;;  %v1372_v54 = vrot.slane %v1370_v46, 5  ;;  %v1380_v59 = vshll.u32 %v3223_v14, 16  ;;  %v2046_v46 = vld [vmem:[%s2921_s9 + $0x18] sm:$0xe] }
  0xaf   : > { %2175 = vmatmul.mubr.msk.bf16.gmra.mrb[4].mxu1 %vm379_vm4, %v1941_v31  ;;  %v1374_v31 = vshrl.u32 %v3207_v7, 16  ;;  %v1367_v22 = vor.u32 %v1366_v50, %v1363_v49  ;;  %v1385_v63 = vshrl.u32 %v2035_v19, 16  ;;  %v1952_v8 = vcombine.low %v593_v43, %v596_v44  ;;  %v1980_v43 = vld [vmem:[%s2921_s9 + $0x24] sm:$0xf] }
  0xb0   : > { %2180 = vmatprep.mubr.msk.bf16.mxu1 %vm379_vm4, %v1950_v15  ;;  %v601_v62 = vrot.slane %v599_v0, 4  ;;  %v1388_v9 = vshll.u32 %v2035_v19, 16  ;;  %v1394_v10 = vshll.u32 %v3230_v53, 16  ;;  %v2038_v61 = vcombine.low %v1325_v51, %v1335_v57 }
  0xb1   : > { %v1376_v32 = vrot.slane %v1374_v31, 4  ;;  %v1358_v12 = vrot.slane %v1356_v45, 5  ;;  %v1354_v15 = vrot.slane %v1353_v48, 4  ;;  %v1387_v3 = vrot.slane %v1385_v63, 4 }
  0xb2   : > { %2221 = vmatmul.mubr.msk.bf16.vlgmr.msra.gmra.mrb[0].mxu0 %vm379_vm4, %v2457_v23  ;;  %v1390_v16 = vrot.slane %v1388_v9, 5  ;;  %v1398_v20 = vshrl.u32 %v3230_v53, 16  ;;  %v1368_v23 = vrot.slane %v1367_v22, 4  ;;  %v1382_v26 = vrot.slane %v1380_v59, 5  ;;  %v1983_v9 = vld [vmem:[%s2921_s9 + $0x30] sm:$0xf] }
  0xb3   : > { %2229 = vmatpush3.bf16.msra.mxu0 %v3157_v6  ;;  %2224 = vmatprep.mubr.msk.bf16.mxu0 %vm379_vm4, %v2458_v25  ;;  %v1344_v6 = vrot.slane %v1343_v58, 4  ;;  %v1377_v13 = vor.u32 %v1376_v32, %v1372_v54  ;;  %v3251_v33 = vrot.slane %v1394_v10, 5  ;;  %v600_v39 = vsel %vm3068_vm7, %v1949_v60, %v599_v0 }
  0xb4   : > { %2323 = vmatprep.subr.msk.bf16.mxu0 %vm392_vm0, %v3214_v38  ;;  %v1400_v35 = vrot.slane %v1398_v20, 4  ;;  %v603_v24 = vsel %vm3068_vm7, %v601_v62, %v602_v5  ;;  %v1359_v42 = vsel %vm2982_vm3, %v1354_v15, %v1358_v12  ;;  %v1391_v37 = vor.u32 %v1390_v16, %v1387_v3  ;;  %v2048_v16 = vld [vmem:[%s2921_s9 + $0x30] sm:$0xe] }
  0xb5   : > { %v1378_v25 = vrot.slane %v1377_v13, 4  ;;  %v1404_v17 = vshll.u32 %v3249_v40, 16  ;;  %v1373_v41 = vsel %vm2982_vm3, %v1368_v23, %v1372_v54  ;;  %v1953_v0 = vcombine.low %v600_v39, %v603_v24  ;;  %v2047_v13 = vld [vmem:[%s2921_s9 + $0x24] sm:$0xe] }
  0xb6   : > { %v886_v5 = vshrl.u32 %v1980_v43, 16  ;;  %v889_v44 = vshll.u32 %v1980_v43, 16  ;;  %v895_v19 = vshll.u32 %v3078_v27, 16  ;;  %v899_v58 = vshrl.u32 %v3078_v27, 16 }
  0xb7   : > { %2181 = vmatmul.mubr.msk.bf16.vlgmr.msra.gmra.mrb[0].mxu1 %vm379_vm4, %v1951_v56  ;;  %v1383_v60 = vsel %vm2982_vm3, %v1378_v25, %v1382_v26  ;;  %v1401_v56 = vor.u32 %v1400_v35, %v3251_v33  ;;  %v1392_v50 = vrot.slane %v1391_v37, 4  ;;  %v1406_v31 = vrot.slane %v1404_v17, 5 }
  0xb8   : > { %2189 = vmatpush3.bf16.msra.mxu1 %v3167_v47  ;;  %2184 = vmatprep.mubr.msk.bf16.mxu1 %vm379_vm4, %v1952_v8  ;;  %v1349_v47 = vsel %vm2982_vm3, %v1344_v6, %v3211_v28  ;;  %v1528_v28 = vrot.slane %v3160_v29, 5  ;;  %v2040_v49 = vcombine.low %v1373_v41, %v1383_v60  ;;  %v888_v51 = vrot.slane %v886_v5, 4  ;;  %v2462_v6 = vld [vmem:[%s2921_s9 + $0x24] sm:$0xff]  }
  0xb9   : > { %2319 = vmatprep.subr.msk.bf16.mxu1 %vm392_vm0, %v2937_v1  ;;  %v2039_v45 = vcombine.low %v1349_v47, %v1359_v42  ;;  %v2460_v1 = vld [vmem:[%s2921_s9 + $0xc] sm:$0xff]   ;;  %v1402_v57 = vrot.slane %v1401_v56, 4  ;;  %v891_v48 = vrot.slane %v889_v44, 5  ;;  %v897_v54 = vrot.slane %v895_v19, 5  ;;  %v2049_v44 = vld [vmem:[%s2921_s9 + $0x3c] sm:$0xe] }
  0xba   : > { %2225 = vmatmul.mubr.msk.bf16.gmra.mrb[4].mxu0 %vm379_vm4, %v2459_v21  ;;  %v901_v22 = vrot.slane %v899_v58, 4  ;;  %v1581_v29 = vsel %vm392_vm0, %v3214_v38, 0  ;;  %v2050_v32 = vrot.slane %v2046_v46, 9  ;;  %v1530_v59 = vrot.slane %v1528_v28, 4 }
  0xbb   : > { %2230 = vmatprep.mubr.msk.bf16.mxu0 %vm379_vm4, %v2038_v61  ;;  %v1531_v27 = vrot.slane %v3163_v34, 5  ;;  %v892_v63 = vor.u32 %v891_v48, %v888_v51  ;;  %v905_v62 = vshll.u32 %v3083_v36, 16  ;;  %v1397_v38 = vsel %vm2982_vm3, %v1392_v50, %v3251_v33  ;;  %v2461_v61 = vld [vmem:[%s2921_s9 + $0x18] sm:$0xff]  }
  0xbc   : > { %v902_v8 = vor.u32 %v901_v22, %v897_v54  ;;  %v1407_v34 = vsel %vm2982_vm3, %v1402_v57, %v1406_v31  ;;  %v1535_v10 = vrot.slane %v3190_v55, 5  ;;  %v1529_v12 = vsel %vm3068_vm7, %v2050_v32, %v1528_v28 }
  0xbd   : > { %v1532_v36 = vsel %vm3068_vm7, %v1530_v59, %v1531_v27  ;;  %v1542_v21 = vrot.slane %v3207_v7, 5  ;;  %v919_v15 = vshll.u32 %v3107_v52, 16  ;;  %v923_v3 = vshrl.u32 %v3107_v52, 16 }
  0xbe   : > { %v910_v20 = vshrl.u32 %v1983_v9, 16  ;;  %v913_v23 = vshll.u32 %v1983_v9, 16  ;;  %v2041_v25 = vcombine.low %v1397_v38, %v1407_v34  ;;  %v893_v55 = vrot.slane %v892_v63, 4 }
  0xbf   : > { %2185 = vmatmul.mubr.msk.bf16.gmra.mrb[4].mxu1 %vm379_vm4, %v1953_v0  ;;  %v903_v26 = vrot.slane %v902_v8, 4  ;;  %v907_v33 = vrot.slane %v905_v62, 5  ;;  %v2054_v35 = vcombine.low %v1529_v12, %v1532_v36  ;;  %v2051_v39 = vrot.slane %v2047_v13, 9  ;;  %v2463_v0 = vld [vmem:[%s2921_s9 + $0x30] sm:$0xff]  }
  0xc0   : > { %2190 = vmatprep.mubr.msk.bf16.mxu1 %vm379_vm4, %v2460_v1  ;;  %v1537_v24 = vrot.slane %v1535_v10, 4  ;;  %v1538_v43 = vrot.slane %v3204_v11, 5  ;;  %v2052_v47 = vrot.slane %v2048_v16, 9  ;;  %v1544_v7 = vrot.slane %v1542_v21, 4 }
  0xc1   : > { %v1545_v42 = vrot.slane %v3223_v14, 5  ;;  %v921_v52 = vrot.slane %v919_v15, 5  ;;  %v925_v37 = vrot.slane %v923_v3, 4  ;;  %v912_v17 = vrot.slane %v910_v20, 4 }
  0xc2   : > { %2231 = vmatmul.mubr.msk.bf16.vlgmr.msra.gmra.mrb[0].mxu0 %vm379_vm4, %v2039_v45  ;;  %v915_v41 = vrot.slane %v913_v23, 5  ;;  %v898_v11 = vsel %vm2982_vm3, %v893_v55, %v897_v54  ;;  %v908_v60 = vsel %vm2982_vm3, %v903_v26, %v907_v33  ;;  %v1536_v14 = vsel %vm3068_vm7, %v2051_v39, %v1535_v10 }
  0xc3   : > { %2239 = vmatpush3.bf16.msra.mxu0 %v1581_v29  ;;  %2234 = vmatprep.mubr.msk.bf16.mxu0 %vm379_vm4, %v2040_v49  ;;  %v1549_v56 = vrot.slane %v3230_v53, 5  ;;  %v1543_v28 = vsel %vm3068_vm7, %v2052_v47, %v1542_v21  ;;  %v1546_v5 = vsel %vm3068_vm7, %v1544_v7, %v1545_v42  ;;  %v926_v45 = vor.u32 %v925_v37, %v921_v52 }
  0xc4   : > { %v929_v1 = vshll.u32 %v3119_v2, 16  ;;  %v1988_v46 = vcombine.low %v898_v11, %v908_v60  ;;  %v916_v19 = vor.u32 %v915_v41, %v912_v17  ;;  %v2056_v49 = vcombine.low %v1543_v28, %v1546_v5 }
  0xc5   : > { %v2053_v50 = vrot.slane %v2049_v44, 9  ;;  %v1551_v31 = vrot.slane %v1549_v56, 4  ;;  %v1552_v51 = vrot.slane %v3249_v40, 5  ;;  %v927_v53 = vrot.slane %v926_v45, 4 }
  0xc6   : > { %v931_v57 = vrot.slane %v929_v1, 5  ;;  %v917_v48 = vrot.slane %v916_v19, 4  ;;  %vm1690_vm8 = vcmask 1040384  }
  0xc7   : > { %2191 = vmatmul.mubr.msk.bf16.vlgmr.msra.gmra.mrb[0].mxu1 %vm379_vm4, %v2461_v61  ;;  %v1550_v2 = vsel %vm3068_vm7, %v2053_v50, %v1549_v56  ;;  %v1553_v54 = vsel %vm3068_vm7, %v1551_v31, %v1552_v51 }
  0xc8   : > { %2249 = vmatpush3.bf16.msra.mxu1 %v2948_v4  ;;  %2194 = vmatprep.mubr.msk.bf16.mxu1 %vm379_vm4, %v2462_v6  ;;  %v1539_v4 = vsel %vm3068_vm7, %v1537_v24, %v1538_v43  ;;  %v922_v40 = vsel %vm2982_vm3, %v917_v48, %v921_v52  ;;  %v932_v22 = vsel %vm2982_vm3, %v927_v53, %v931_v57 }
  0xc9   : > { %v2055_v58 = vcombine.low %v1536_v14, %v1539_v4  ;;  %v2057_v29 = vcombine.low %v1550_v2, %v1553_v54  ;;  %v1989_v32 = vcombine.low %v922_v40, %v932_v22 }
  0xca   : > { %2235 = vmatmul.mubr.msk.bf16.gmra.mrb[4].mxu0 %vm379_vm4, %v2041_v25 }
  0xcb   : > { %2240 = vmatprep.mubr.msk.bf16.mxu0 %vm379_vm4, %v2054_v35 }
  0xcf   : > { %2195 = vmatmul.mubr.msk.bf16.gmra.mrb[4].mxu1 %vm379_vm4, %v2463_v0 }
  0xd0   : > { %2204 = vmatprep.mubr.msk.bf16.mxu1 %vm379_vm4, %v1988_v46 }
  0xd2   : > { %2241 = vmatmul.mubr.msk.bf16.vlgmr.msra.gmra.mrb[0].mxu0 %vm379_vm4, %v2055_v58 }
  0xd3   : > { %2244 = vmatprep.mubr.msk.bf16.mxu0 %vm379_vm4, %v2056_v49 }
  0xda   : > { %2245 = vmatmul.mubr.msk.bf16.gmra.mrb[4].mxu0 %vm379_vm4, %v2057_v29 }
  0xdb   : > { %2205 = vmatmul.mubr.msk.bf16.vlgmr.msra.gmra.mrb[4].mxu1 %vm379_vm4, %v1989_v32 }
 0x19a   : > { %v2192_v59 = vpop.f32.mrb[0].mxu1 }
 0x19b   : > { %v786_v27 = vpop.f32.mrb[1].mxu1 }
 0x19c   : > { %v2193_v63 = vpop.f32.mrb[2].mxu1 }
 0x19d   : > { %v789_v8 = vpop.f32.mrb[3].mxu1 }
 0x1a5   : > { %v2242_v62 = vpop.f32.mrb[0].mxu0 }
 0x1a6   : > { %v3352_v9 = vadd.f32 %v2242_v62, %v2192_v59  ;;  %v1617_v18 = vpop.f32.mrb[1].mxu0 }
 0x1a7   : > { %v3354_v38 = vadd.f32 %v1617_v18, %v786_v27  ;;  %v2243_v34 = vpop.f32.mrb[2].mxu0 }
 0x1a8   : > { %v3356_v10 = vadd.f32 %v2243_v34, %v2193_v63  ;;  %v1620_v30 = vpop.f32.mrb[3].mxu0  ;;  %v1671_v13 = vmul.f32 %v3352_v9, %v3352_v9 }
 0x1a9   : > { %v3358_v61 = vadd.f32 %v1620_v30, %v789_v8  ;;  %v1669_v6 = vmul.f32 %v3354_v38, %v3354_v38 }
 0x1aa   : > { %v1672_v20 = vmul.f32 %v3356_v10, %v3356_v10 }
 0x1ab   : > { %v1656_v12 = vadd.f32 %v3358_v61, %v3354_v38  ;;  %v1670_v36 = vmul.f32 %v3358_v61, %v3358_v61 }
 0x1ad   : > { %v1657_v21 = vadd.f32 %v3352_v9, %v1656_v12  ;;  %v1677_v15 = vadd.f32 %v1670_v36, %v1669_v6  ;;  %v2246_v3 = vpop.f32.mrb[4].mxu0 }
 0x1ae   : > { %v1633_v16 = vpop.f32.mrb[5].mxu0  ;;  %v2206_v25 = vpop.f32.mrb[4].mxu1 }
 0x1af   : > { %v1678_v23 = vadd.f32 %v1677_v15, %v1671_v13  ;;  %v1658_v55 = vadd.f32 %v3356_v10, %v1657_v21  ;;  %v2247_v26 = vpop.f32.mrb[6].mxu0  ;;  %v2254_v33 = vadd.f32 %v2246_v3, %v2206_v25  ;;  %v1012_v35 = vpop.f32.mrb[5].mxu1 }
 0x1b0   : > { %v1636_v39 = vpop.f32.mrb[7].mxu0  ;;  %v2255_v24 = vadd.f32 %v1633_v16, %v1012_v35  ;;  %v2207_v47 = vpop.f32.mrb[6].mxu1 }
 0x1b1   : > { %v1679_v43 = vadd.f32 %v1678_v23, %v1672_v20  ;;  %v2256_v7 = vadd.f32 %v2247_v26, %v2207_v47  ;;  %v1015_v42 = vpop.f32.mrb[7].mxu1  ;;  %v1675_v14 = vmul.f32 %v2254_v33, %v2254_v33 }
 0x1b2   : > { %v1659_v52 = vadd.f32 %v2255_v24, %v1658_v55  ;;  %v1673_v37 = vmul.f32 %v2255_v24, %v2255_v24  ;;  %v2257_v17 = vadd.f32 %v1636_v39, %v1015_v42 }
 0x1b3   : > { %v1676_v0 = vmul.f32 %v2256_v7, %v2256_v7 }
 0x1b4   : > { %v1680_v41 = vadd.f32 %v1679_v43, %v1673_v37  ;;  %v1660_v11 = vadd.f32 %v2257_v17, %v1659_v52  ;;  %v1674_v60 = vmul.f32 %v2257_v17, %v2257_v17 }
 0x1b6   : > { %v1661_v4 = vadd.f32 %v2254_v33, %v1660_v11  ;;  %v1681_v56 = vadd.f32 %v1680_v41, %v1674_v60 }
 0x1b8   : > { %v1662_v28 = vadd.f32 %v2256_v7, %v1661_v4  ;;  %v1682_v5 = vadd.f32 %v1681_v56, %v1675_v14 }
 0x1ba   : > { %v1663_v44 = vrot.slane %v1662_v28, 4  ;;  %v1683_v45 = vadd.f32 %v1682_v5, %v1676_v0 }
 0x1bc   : > { %v1664_v1 = vadd.f32 %v1663_v44, %v1662_v28  ;;  %v1684_v46 = vrot.slane %v1683_v45, 4 }
 0x1be   : > { %v1665_v19 = vrot.slane %v1664_v1, 2  ;;  %v1685_v58 = vadd.f32 %v1684_v46, %v1683_v45 }
 0x1c0   : > { %v1666_v49 = vadd.f32 %v1665_v19, %v1664_v1  ;;  %v1686_v50 = vrot.slane %v1685_v58, 2 }
 0x1c2   : > { %v1667_v31 = vrot.slane %v1666_v49, 1  ;;  %v1687_v51 = vadd.f32 %v1686_v50, %v1685_v58  ;;  %1695 = sbr.rel (%p2062_p9) target bundleno = 458 (0x1ca), region = 40 }
 0x1c4   : > { %v1688_v53 = vrot.slane %v1687_v51, 1  ;;  %v1668_v57 = vadd.f32 %v1667_v31, %v1666_v49 }
 0x1c6   : > { %v1689_v48 = vadd.f32 %v1688_v53, %v1687_v51 }
 0x1c8   : > { %v1691_v2 = vsel %vm1690_vm8, %v1668_v57, %v1689_v48 }
 0x1c9   : > { %1696 = vst [vmem:[%s3375_s27] sm:$0x3] %v1691_v2 }
 0x1ca PF: > { %p2063_p11 = scmp.le.s32.totalorder %s2664_s18, 0 }
 0x1cc   : > { %1700 = sbr.rel (%p2063_p11) target bundleno = 468 (0x1d4), region = 44 }
 0x1d0   : > { %v1701_v54 = vld [vmem:[%s3375_s27] sm:$0x3] (!%p2063_p11) }
 0x1d1   : > { %v1702_v40 = vadd.f32 (!%p2063_p11), %v1701_v54, %v1691_v2 }
 0x1d3   : > { %1703 = vst [vmem:[%s3375_s27] sm:$0x3] %v1702_v40 }
 0x1d4 PF: > { %v2093_v22 = vpack.c.bf16 %v3358_v61, %v3354_v38  ;;  %v2098_v29 = vpack.c.bf16 %v3356_v10, %v3352_v9  ;;  %v2103_v32 = vpack.c.bf16 %v2257_v17, %v2255_v24  ;;  %v2108_v59 = vpack.c.bf16 %v2256_v7, %v2254_v33  ;;  %s2089_s24 = sshll.u32 %s2664_s18, 3  ;;  %s2076_s15 = sshll.u32 %s2668_s19, 5 }
 0x1d5   : > { %s1767_s10 = sshll.u32 %s243_s25, 4  ;;  %s1764_s11 = sadd.s32 %s2089_s24, %s2076_s15  ;;  %s3390_s10 = int_to_ptr.vmem [resolvable:$true] %s1767_s10 }
 0x1d6   : > { %2094 = vst [vmem:[%s243_s25] sm:$0xff] %v2093_v22   ;;  %2110 = vst [vmem:[%s243_s25 + $0x8] sm:$0xff] %v2098_v29   ;;  %s2077_s29 = sshll.u32 %s1764_s11, 6  ;;  %s3538_s2 = sld [smem:[#allocation22_spill]] }
 0x1d7   : > { %2111 = vst [vmem:[%s243_s25 + $0x10] sm:$0xff] %v2103_v32   ;;  %2112 = vst [vmem:[%s243_s25 + $0x18] sm:$0xff] %v2108_v59   ;;  %s1745_s18 = scalar_lea.sflag [#allocation4], %s2917_s4  ;;  %s2522_s1 = scalar_lea.vmem %s3390_s10, 512 }
 0x1d8   : > { %p2523_p0 = scmp.ne.s32.totalorder %s3390_s10, %s2522_s1  ;;  %s2688_s9 = smov [#allocation7]  }
 0x1d9   : > { %s2526_s3 = sshll.u32 %s2688_s9, 4  ;;  %s2527_s3 = int_to_ptr.vmem [resolvable:$false] %s2526_s3 }
 0x1da   : > { %p2524_p3 = pnand %p2523_p0, %p2851_p12  ;;  %s2528_s5 = scalar_lea.vmem %s2527_s3, 1024 }
 0x1db   : > { %p2529_p8 = scmp.lt.s32.totalorder %s3390_s10, %s2527_s3  ;;  %p2530_p13 = scmp.lt.s32.totalorder %s2528_s5, %s2522_s1 }
 0x1dc   : > { %s3395_s8 = scalar_lea.hbm %s3538_s2, %s2077_s29  ;;  %p2525_p6 = pneg %p2524_p3 }
 0x1dd   : > { %p2531_p2 = por %p2530_p13, %p2529_p8 }
 0x1df   : > { %p2532_p4 = pnand %p2531_p2, %p2525_p6 }
 0x1e1   : > { %2535 = shalt.err (!%p2532_p4)
}
 0x1e2   : > { %s2536_s25 = scalar_lea.hbm %s3395_s8, 512  ;;  %s2540_s29 = scalar_lea.hbm %s3538_s2, 4096 }
 0x1e3   : > { %p2537_p5 = scmp.ne.s32.totalorder %s3395_s8, %s2536_s25  ;;  %p2541_p7 = scmp.lt.u32.totalorder %s3395_s8, %s3538_s2 }
 0x1e4   : > { %p2542_p9 = scmp.lt.u32.totalorder %s2540_s29, %s2536_s25  ;;  %p2544_p0 = scmp.lt.u32.totalorder %s2536_s25, %s3395_s8 }
 0x1e5   : > { %p2538_p10 = pnand %p2537_p5, %p2851_p12 }
 0x1e6   : > { %p2543_p11 = por %p2542_p9, %p2541_p7 }
 0x1e7   : > { %p2539_p1 = pneg %p2538_p10 }
 0x1e8   : > { %p2545_p3 = por %p2544_p0, %p2543_p11 }
 0x1ea   : > { %p2546_p6 = pnand %p2545_p3, %p2539_p1 }
 0x1ec   : > { %2549 = shalt.err (!%p2546_p6)
}
 0x1ed   : > { %s2689_s1 = smov 64   ;;  %s3539_s9 = sld [smem:[#allocation17_spill]] }
 0x1ee   : > { %s2690_s3 = smov 4   ;;  %s3540_s25 = sld [smem:[#allocation23_spill]] }
 0x1ef   : > { %2334 = dma.vmem_to_hbm [thread:$0]  (%p2851_p12), %s3390_s10, 512, %s3395_s8, %s1745_s18, %s2689_s1, %s2689_s1, %s2690_s3  }
 0x1f0   : > { %s1784_s29 = sshll.u32 %s3375_s27, 4  ;;  %s1750_s6 = scalar_lea.sflag [#allocation9], %s248_s30  ;;  %s1785_s29 = int_to_ptr.vmem [resolvable:$true] %s1784_s29 }
 0x1f1   : > { %s2550_s28 = scalar_lea.vmem %s1785_s29, 32  ;;  %s2691_s0 = smov [#allocation8]  }
 0x1f2   : > { %p2551_p8 = scmp.ne.s32.totalorder %s1785_s29, %s2550_s28  ;;  %s2554_s2 = sshll.u32 %s2691_s0, 4  ;;  %s2555_s2 = int_to_ptr.vmem [resolvable:$false] %s2554_s2 }
 0x1f3   : > { %p3541_p13 = scmp.ne.s32.totalorder %s3539_s9, 0  ;;  %s2556_s7 = scalar_lea.vmem %s2555_s2, 64 }
 0x1f4   : > { %s3426_s11 = scalar_lea.hbm %s3540_s25, %s2076_s15  ;;  %p2557_p12 = scmp.lt.s32.totalorder %s1785_s29, %s2555_s2 }
 0x1f5   : > { %p2552_p2 = pnand %p2551_p8, %p3541_p13  ;;  %p2558_p5 = scmp.lt.s32.totalorder %s2556_s7, %s2550_s28 }
 0x1f7   : > { %p2553_p4 = pneg %p2552_p2  ;;  %p2559_p10 = por %p2558_p5, %p2557_p12 }
 0x1f9   : > { %p2560_p1 = pnand %p2559_p10, %p2553_p4 }
 0x1fb   : > { %2563 = shalt.err (!%p2560_p1)
}
 0x1fc   : > { %s2564_s19 = scalar_lea.hbm %s3426_s11, 32  ;;  %s2568_s0 = scalar_lea.hbm %s3540_s25, 64 }
 0x1fd   : > { %p2565_p7 = scmp.ne.s32.totalorder %s3426_s11, %s2564_s19  ;;  %p2569_p0 = scmp.lt.u32.totalorder %s3426_s11, %s3540_s25 }
 0x1fe   : > { %p2570_p3 = scmp.lt.u32.totalorder %s2568_s0, %s2564_s19  ;;  %p2572_p8 = scmp.lt.u32.totalorder %s2564_s19, %s3426_s11 }
 0x1ff   : > { %p2566_p9 = pnand %p2565_p7, %p3541_p13 }
 0x200   : > { %p2571_p6 = por %p2570_p3, %p2569_p0 }
 0x201   : > { %p2567_p11 = pneg %p2566_p9 }
 0x202   : > { %p2573_p2 = por %p2572_p8, %p2571_p6 }
 0x204   : > { %p2574_p4 = pnand %p2573_p2, %p2567_p11 }
 0x206   : > { %2577 = shalt.err (!%p2574_p4)
}
 0x207   : > { %2335 = dma.vmem_to_hbm [thread:$0]  (%p3541_p13), %s1785_s29, 32, %s3426_s11, %s1750_s6  }
 0x208 PF: > { %s3542_s15 = sld [smem:[#allocation15_spill]]  ;;  %s3543_s10 = sld [smem:[#allocation16_spill]] }
 0x209   : > { %p2356_p12 = scmp.ge.s32.totalorder %s2680_s22, 2 }
 0x20e   : > { %s1796_s8 = sand.u32 1, %s3542_s15   ;;  %p3544_p5 = scmp.ne.s32.totalorder %s3543_s10, 0 }
 0x20f   : > { %s1797_s18 = scalar_lea.sflag [#allocation4], %s1796_s8 }
 0x210   : > { %p2347_p10 = pnand %p2356_p12, %p3544_p5 }
 0x212   : > { %2631 = dma.done.wait (!%p2347_p10), %s1797_s18, 512  }
 0x213   : > { %2633 = vsyncadd (!%p2347_p10), %s1797_s18, 4294966784  ;;  %s3545_s1 = sld [smem:[#allocation14_spill]]  ;;  %s3546_s3 = sld [smem:[#allocation18_spill]] }
 0x219   : > { %s1805_s5 = sand.u32 1, %s3545_s1   ;;  %p3547_p1 = scmp.ne.s32.totalorder %s3546_s3, 0 }
 0x21a   : > { %s1806_s24 = scalar_lea.sflag [#allocation9], %s1805_s5 }
 0x21b   : > { %p2350_p7 = pnand %p2356_p12, %p3547_p1 }
 0x21d   : > { %2635 = dma.done.wait (!%p2350_p7), %s1806_s24, 32  }
 0x21e   : > { %2637 = vsyncadd (!%p2350_p7), %s1806_s24, 4294967264  ;;  %s24_s22 = sadd.s32 1, %s2680_s22   ;;  %s3548_s9 = smov %s2865_s12 }
 0x21f   : > { %p21_p13 = scmp.ge.s32.totalorder %s24_s22, 10   ;;  %s3549_s11 = sld [smem:[#allocation19_spill]] }
 0x220   : > { %s3550_s12 = smov %s2644_s13  ;;  %s3551_s13 = smov %s2648_s14 }
 0x221   : > { %s3552_s14 = smov %s3548_s9  ;;  %s3553_s15 = smov %s2656_s16 }
 0x222   : > { %s3554_s16 = smov %s2660_s17  ;;  %s3555_s17 = smov %s2868_s26 }
 0x223   : > { %s3556_s18 = smov %s2672_s20  ;;  %s3557_s19 = smov %s2676_s21 }
 0x224   : > { %s3559_s21 = smov %s3565_s23  ;;  %23 = sbr.rel (!%p21_p13) target bundleno = 17 (0x11), region = 113 }
 0x225   : > { %s3558_s20 = smov %s3549_s11 }
 0x22b   :  { %1811 = vsyncpa [#allocation3], 1 }
 0x22c   :  { %1813 = vsyncpa [#allocation3 + $0x1], 1 }
 0x22d   :  { %1814 = vsyncpa [#allocation6], 1 }
 0x22e   :  { %1815 = vsyncpa [#allocation4], 1 }
 0x22f   :  { %1817 = vsyncpa [#allocation4 + $0x1], 1 }
 0x230   :  { %1818 = vsyncpa [#allocation9], 1 }
 0x231   :  { %1820 = vsyncpa [#allocation9 + $0x1], 1 }

</bundles_post_ra>
